<compile_context>
chip_gen: v7x
topology: tpu7x:2x2x1
jax: 0.10.0
libtpu: 0.0.40
codegen_flags: <defaults>
</compile_context>

<pallas_src>
import functools

import jax
import jax.numpy as jnp
from jax.experimental import pallas as pl
from jax.experimental.pallas import tpu as pltpu


def _round_up(x, m):
    return ((x + m - 1) // m) * m


# ----------------------------------------------------------------------------
# Pallas kernel: single invocation, everything VMEM-resident.
# ----------------------------------------------------------------------------
def _encoder_kernel(a_ref, s_ref, r_ref, h0_ref, eps_ref,
                    wa_ref, ba_ref, ws_ref, bs_ref, wr_ref, br_ref,
                    wia_ref, wis_ref, wir_ref, bi_ref,
                    wh_ref, bhn_ref,
                    whead_ref, bhead_ref,
                    out_ref, mu_ref, lv_ref, samp_ref, hlast_ref,
                    gi_scr,
                    *, seq_len, batch_p, hid_p, lat_p, with_sample, mxu_dtype):
    dot = functools.partial(jnp.dot, preferred_element_type=jnp.float32)
    relu = lambda v: jnp.maximum(v, 0.0)
    md = mxu_dtype

    # ---- Phase 1: time-parallel matmuls, batched over all T*Bp rows. -------
    ha = relu(dot(a_ref[...].astype(md), wa_ref[...]) + ba_ref[...])   # [TB, Ea]
    hs = relu(dot(s_ref[...].astype(md), ws_ref[...]) + bs_ref[...])   # [TB, Es]
    if r_ref.shape[-1] == 1:
        # reward_size == 1: K=1 matmul as an outer-product broadcast (VPU, f32).
        hr = relu(r_ref[...] * wr_ref[...] + br_ref[...])              # [TB, Er]
    else:
        hr = relu(dot(r_ref[...].astype(md), wr_ref[...].astype(md)) + br_ref[...])

    # Fused input-to-hidden gate projection for ALL time steps, expressed as a
    # sum of matmuls over per-feature weight row blocks (no misaligned concat).
    # b_ir+b_hr and b_iz+b_hz are pre-folded into bi_ref (wrapper side).
    gi_scr[...] = (dot(ha.astype(md), wia_ref[...])
                   + dot(hs.astype(md), wis_ref[...])
                   + dot(hr.astype(md), wir_ref[...])
                   + bi_ref[...])                                      # [TB, 3Hp]

    # ---- Phase 2: serial GRU recurrence (PyTorch gate convention). ---------
    # Loop-invariant reads / broadcasts hoisted out of the serial chain.
    wh = wh_ref[...]                                                   # [Hp, 3Hp]
    bhn = jnp.broadcast_to(bhn_ref[...], (batch_p, hid_p))             # [Bp, Hp]

    def step(t, h_prev):
        off = pl.multiple_of(t * batch_p, batch_p)                     # aligned
        gi_t = gi_scr[pl.ds(off, batch_p), :]                          # [Bp, 3Hp]
        gh = dot(h_prev, wh)                                           # one push
        r_g = jax.nn.sigmoid(gi_t[:, :hid_p] + gh[:, :hid_p])
        z_g = jax.nn.sigmoid(gi_t[:, hid_p:2 * hid_p] + gh[:, hid_p:2 * hid_p])
        n_g = jnp.tanh(gi_t[:, 2 * hid_p:] + r_g * (gh[:, 2 * hid_p:] + bhn))
        h_new = (1.0 - z_g) * n_g + z_g * h_prev
        out_ref[pl.ds(off, batch_p), :] = h_new                        # lane-dense
        return h_new

    h_last = jax.lax.fori_loop(0, seq_len, step, h0_ref[...],
                               unroll=min(8, seq_len))
    hlast_ref[...] = h_last                                            # once

    # ---- Phase 3: fused latent heads, batched over all T*Bp rows. ----------
    h_all = out_ref[...]                                               # [TB, Hp]
    head = dot(h_all.astype(md), whead_ref[...]) + bhead_ref[...]      # [TB, 2Lp]
    mu = head[:, :lat_p]
    lv = head[:, lat_p:]
    mu_ref[...] = mu
    lv_ref[...] = lv
    if with_sample:
        samp_ref[...] = mu + eps_ref[...] * jnp.exp(0.5 * lv)
    else:
        samp_ref[...] = mu


def _run_block_rnn_encoder(params, actions, states, rewards, h0, eps, sample,
                           mxu_dtype=jnp.bfloat16):
    T, B, Da = actions.shape
    Ds = states.shape[-1]
    Dr = rewards.shape[-1]
    Ea = params["w_a"].shape[-1]
    Es = params["w_s"].shape[-1]
    Er = params["w_r"].shape[-1]
    H = params["w_hr"].shape[0]
    L = params["w_mu"].shape[-1]

    Hp = _round_up(H, 128)        # lane-dense hidden
    Lp = _round_up(L, 128)        # lane-dense latent
    Bp = _round_up(B, 8)          # sublane-aligned batch for per-step slices
    TB = T * Bp

    def pad_b(x):                 # pad the batch axis (axis=1) with zeros
        if Bp == B:
            return x
        pad = [(0, 0)] * x.ndim
        pad[1] = (0, Bp - B)
        return jnp.pad(x, pad)

    def pad2(w, r, c):            # zero-pad a 2-D array to (r, c)
        return jnp.pad(w, ((0, r - w.shape[0]), (0, c - w.shape[1])))

    # -------------------- fused / padded weight preparation -----------------
    # Per-gate hidden weights fused to [Hp, 3Hp]; gate splits at 128 multiples.
    w_h = jnp.concatenate([pad2(params["w_hr"], Hp, Hp),
                           pad2(params["w_hz"], Hp, Hp),
                           pad2(params["w_hn"], Hp, Hp)], axis=1)
    # Per-gate input weights fused to [In, 3Hp], then split by feature rows so
    # the kernel never materializes concat(ha, hs, hr).
    w_i = jnp.concatenate([pad2(params["w_ir"], Ea + Es + Er, Hp),
                           pad2(params["w_iz"], Ea + Es + Er, Hp),
                           pad2(params["w_in"], Ea + Es + Er, Hp)], axis=1)
    w_i_a = w_i[:Ea].astype(mxu_dtype)
    w_i_s = w_i[Ea:Ea + Es].astype(mxu_dtype)
    w_i_r = w_i[Ea + Es:].astype(mxu_dtype)
    # Fold b_hr / b_hz into the phase-1 bias (b_hn must stay inside the r*(.)).
    b_i = jnp.concatenate([pad2(params["b_ir"] + params["b_hr"], 1, Hp),
                           pad2(params["b_iz"] + params["b_hz"], 1, Hp),
                           pad2(params["b_in"], 1, Hp)], axis=1)
    b_hn = pad2(params["b_hn"], 1, Hp)
    # Fused latent heads [Hp, 2Lp].
    w_head = jnp.concatenate([pad2(params["w_mu"], Hp, Lp),
                              pad2(params["w_lv"], Hp, Lp)], axis=1).astype(mxu_dtype)
    b_head = jnp.concatenate([pad2(params["b_mu"], 1, Lp),
                              pad2(params["b_lv"], 1, Lp)], axis=1)
    w_a = params["w_a"].astype(mxu_dtype)
    w_s = params["w_s"].astype(mxu_dtype)
    w_r = params["w_r"]           # kept f32 (reward_size==1 uses VPU broadcast)

    # -------------------- padded activations --------------------------------
    a2 = pad_b(actions).reshape(TB, Da)
    s2 = pad_b(states).reshape(TB, Ds)
    r2 = pad_b(rewards).reshape(TB, Dr)
    e2 = pad_b(pad2(eps.reshape(T * B, L), T * B, Lp).reshape(T, B, Lp)).reshape(TB, Lp)
    h0p = pad2(h0, Bp, Hp)

    out_shape = [
        jax.ShapeDtypeStruct((TB, Hp), jnp.float32),    # per-step rnn output
        jax.ShapeDtypeStruct((TB, Lp), jnp.float32),    # latent mean
        jax.ShapeDtypeStruct((TB, Lp), jnp.float32),    # latent logvar
        jax.ShapeDtypeStruct((TB, Lp), jnp.float32),    # latent sample
        jax.ShapeDtypeStruct((Bp, Hp), jnp.float32),    # final hidden state
    ]

    # VMEM budget: all I/O + [TB, 3Hp] scratch + phase-1 intermediates.
    est_bytes = 4 * (TB * (Da + Ds + Dr + Lp) + 2 * Bp * Hp
                     + TB * Hp + 3 * TB * Lp + 4 * TB * Hp
                     + Hp * 3 * Hp + Hp * 2 * Lp)
    vmem_limit = int(min(60 << 20, max(32 << 20, 2 * est_bytes)))

    flops = (2 * TB * (Da * Ea + Ds * Es + Dr * Er
                       + (Ea + Es + Er) * 3 * Hp + Hp * 2 * Lp)
             + 2 * T * Bp * Hp * 3 * Hp)
    transcendentals = T * Bp * 3 * Hp + (TB * Lp if sample else 0)
    bytes_accessed = 4 * (TB * (Da + Ds + Dr + Lp) + 2 * Bp * Hp
                          + TB * Hp + 3 * TB * Lp
                          + Hp * 3 * Hp + Hp * 2 * Lp
                          + (Ea + Es + Er) * 3 * Hp)

    kernel = functools.partial(_encoder_kernel, seq_len=T, batch_p=Bp,
                               hid_p=Hp, lat_p=Lp, with_sample=sample,
                               mxu_dtype=mxu_dtype)

    out2, mu2, lv2, samp2, hlast = pl.pallas_call(
        kernel,
        out_shape=out_shape,
        scratch_shapes=[pltpu.VMEM((TB, 3 * Hp), jnp.float32)],
        compiler_params=pltpu.CompilerParams(vmem_limit_bytes=vmem_limit),
        cost_estimate=pl.CostEstimate(flops=int(flops),
                                      transcendentals=int(transcendentals),
                                      bytes_accessed=int(bytes_accessed)),
    )(a2, s2, r2, h0p, e2,
      w_a, params["b_a"], w_s, params["b_s"], w_r, params["b_r"],
      w_i_a, w_i_s, w_i_r, b_i,
      w_h, b_hn,
      w_head, b_head)

    # Restore [T, B, *] layout and trim batch / lane padding.
    output = out2.reshape(T, Bp, Hp)[:, :B, :H]
    mean = mu2.reshape(T, Bp, Lp)[:, :B, :L]
    logvar = lv2.reshape(T, Bp, Lp)[:, :B, :L]
    samp = samp2.reshape(T, Bp, Lp)[:, :B, :L]
    return output, mean, logvar, samp, hlast[:B, :H]


# ----------------------------------------------------------------------------
# Plain-JAX glue: parameter init, prior, and the forward wrapper.
# ----------------------------------------------------------------------------
def _linear_init(key, fan_in, fan_out, bound_in=None):
    kw, kb = jax.random.split(key)
    bound = 1.0 / float(jnp.sqrt(bound_in if bound_in is not None else fan_in))
    w = jax.random.uniform(kw, (fan_in, fan_out), jnp.float32, -bound, bound)
    b = jax.random.uniform(kb, (1, fan_out), jnp.float32, -bound, bound)
    return w, b


def init_params(key, *, action_dim, state_dim, reward_size,
                action_embed, state_embed, reward_embed,
                hidden_size, latent_dim):
    ks = jax.random.split(key, 11)
    w_a, b_a = _linear_init(ks[0], action_dim, action_embed)
    w_s, b_s = _linear_init(ks[1], state_dim, state_embed)
    w_r, b_r = _linear_init(ks[2], reward_size, reward_embed)
    in_dim = action_embed + state_embed + reward_embed
    # Per-gate GRU matrices (r, z, n), PyTorch GRU init bound 1/sqrt(H).
    w_ir, b_ir = _linear_init(ks[3], in_dim, hidden_size, bound_in=hidden_size)
    w_iz, b_iz = _linear_init(ks[4], in_dim, hidden_size, bound_in=hidden_size)
    w_in, b_in = _linear_init(ks[5], in_dim, hidden_size, bound_in=hidden_size)
    w_hr, b_hr = _linear_init(ks[6], hidden_size, hidden_size, bound_in=hidden_size)
    w_hz, b_hz = _linear_init(ks[7], hidden_size, hidden_size, bound_in=hidden_size)
    w_hn, b_hn = _linear_init(ks[8], hidden_size, hidden_size, bound_in=hidden_size)
    w_mu, b_mu = _linear_init(ks[9], hidden_size, latent_dim)
    w_lv, b_lv = _linear_init(ks[10], hidden_size, latent_dim)
    return dict(w_a=w_a, b_a=b_a, w_s=w_s, b_s=b_s, w_r=w_r, b_r=b_r,
                w_ir=w_ir, w_iz=w_iz, w_in=w_in,
                b_ir=b_ir, b_iz=b_iz, b_in=b_in,
                w_hr=w_hr, w_hz=w_hz, w_hn=w_hn,
                b_hr=b_hr, b_hz=b_hz, b_hn=b_hn,
                w_mu=w_mu, b_mu=b_mu, w_lv=w_lv, b_lv=b_lv)


def block_rnn_encoder_forward(params, actions, states, rewards, key,
                              hidden_size, latent_dim,
                              return_prior=True, sample=True,
                              mxu_dtype=jnp.bfloat16):
    """Trajectory-mode forward (hidden_state=None, seq_len > 1)."""
    # utl.squash_action assumed identity (args.norm_actions_post_sampling=False).
    T, B = actions.shape[0], actions.shape[1]
    k_prior, k_seq = jax.random.split(key)

    # Prior: zero hidden, fc_after_gru is empty -> heads applied to zeros.
    prior_hidden = jnp.zeros((1, B, hidden_size), jnp.float32)
    prior_mean = jnp.broadcast_to(params["b_mu"][None], (1, B, latent_dim))
    prior_logvar = jnp.broadcast_to(params["b_lv"][None], (1, B, latent_dim))
    if sample:
        eps_prior = jax.random.normal(k_prior, (1, B, latent_dim), jnp.float32)
        prior_sample = prior_mean + eps_prior * jnp.exp(0.5 * prior_logvar)
    else:
        prior_sample = prior_mean

    h0 = jnp.zeros((B, hidden_size), jnp.float32)   # prior / given hidden state
    eps = (jax.random.normal(k_seq, (T, B, latent_dim), jnp.float32)
           if sample else jnp.zeros((T, B, latent_dim), jnp.float32))

    output, mean, logvar, samp, _h_last = _run_block_rnn_encoder(
        params, actions, states, rewards, h0, eps, sample, mxu_dtype=mxu_dtype)

    if return_prior:
        samp = jnp.concatenate([prior_sample, samp], axis=0)
        mean = jnp.concatenate([prior_mean, mean], axis=0)
        logvar = jnp.concatenate([prior_logvar, logvar], axis=0)
        output = jnp.concatenate([prior_hidden, output], axis=0)

    if mean.shape[0] == 1:
        samp, mean, logvar = samp[0], mean[0], logvar[0]
    return samp, mean, logvar, output


if __name__ == "__main__":
    # Small shapes consistent with the module defaults.
    T, B = 8, 4                         # seq_len, num_processes (batch)
    action_dim, state_dim, reward_size = 2, 2, 1
    action_embed, state_embed, reward_embed = 10, 10, 5
    hidden_size, latent_dim = 64, 32

    root = jax.random.PRNGKey(0)
    k_par, k_a, k_s, k_r, k_sample = jax.random.split(root, 5)

    params = init_params(k_par,
                         action_dim=action_dim, state_dim=state_dim,
                         reward_size=reward_size,
                         action_embed=action_embed, state_embed=state_embed,
                         reward_embed=reward_embed,
                         hidden_size=hidden_size, latent_dim=latent_dim)

    actions = jax.random.normal(k_a, (T, B, action_dim), jnp.float32)
    states = jax.random.normal(k_s, (T, B, state_dim), jnp.float32)
    rewards = jax.random.normal(k_r, (T, B, reward_size), jnp.float32)

    latent_sample, latent_mean, latent_logvar, output = block_rnn_encoder_forward(
        params, actions, states, rewards, k_sample,
        hidden_size=hidden_size, latent_dim=latent_dim,
        return_prior=True, sample=True)

    jax.block_until_ready((latent_sample, latent_mean, latent_logvar, output))
    assert latent_sample.shape == (T + 1, B, latent_dim)
    assert latent_mean.shape == (T + 1, B, latent_dim)
    assert latent_logvar.shape == (T + 1, B, latent_dim)
    assert output.shape == (T + 1, B, hidden_size)
    assert bool(jnp.all(jnp.isfinite(latent_sample)))
    assert bool(jnp.all(jnp.isfinite(output)))
    print("KERNEL_OK")
</pallas_src>

<mosaic_0001>
module attributes {stable_mosaic.version = 11 : i64} {
  func.func @_encoder_kernel(%arg0: memref<64x2xf32, #tpu.memory_space<vmem>>, %arg1: memref<64x2xf32, #tpu.memory_space<vmem>>, %arg2: memref<64x1xf32, #tpu.memory_space<vmem>>, %arg3: memref<8x128xf32, #tpu.memory_space<vmem>>, %arg4: memref<64x128xf32, #tpu.memory_space<vmem>>, %arg5: memref<2x10xbf16, #tpu.memory_space<vmem>>, %arg6: memref<1x10xf32, #tpu.memory_space<vmem>>, %arg7: memref<2x10xbf16, #tpu.memory_space<vmem>>, %arg8: memref<1x10xf32, #tpu.memory_space<vmem>>, %arg9: memref<1x5xf32, #tpu.memory_space<vmem>>, %arg10: memref<1x5xf32, #tpu.memory_space<vmem>>, %arg11: memref<10x384xbf16, #tpu.memory_space<vmem>>, %arg12: memref<10x384xbf16, #tpu.memory_space<vmem>>, %arg13: memref<5x384xbf16, #tpu.memory_space<vmem>>, %arg14: memref<1x384xf32, #tpu.memory_space<vmem>>, %arg15: memref<128x384xf32, #tpu.memory_space<vmem>>, %arg16: memref<1x128xf32, #tpu.memory_space<vmem>>, %arg17: memref<128x256xbf16, #tpu.memory_space<vmem>>, %arg18: memref<1x256xf32, #tpu.memory_space<vmem>>, %arg19: memref<64x128xf32, #tpu.memory_space<vmem>>, %arg20: memref<64x128xf32, #tpu.memory_space<vmem>>, %arg21: memref<64x128xf32, #tpu.memory_space<vmem>>, %arg22: memref<64x128xf32, #tpu.memory_space<vmem>>, %arg23: memref<8x128xf32, #tpu.memory_space<vmem>>, %arg24: memref<64x384xf32, #tpu.memory_space<vmem>>) attributes {dimension_semantics = [], scalar_prefetch = 0 : i64, scratch_operands = 1 : i64, tpu.core_type = #tpu.core_type<tc>} {
    %c0 = arith.constant 0 : index
    %c0_0 = arith.constant 0 : index
    %0 = vector.load %arg0[%c0, %c0_0] : memref<64x2xf32, #tpu.memory_space<vmem>>, vector<64x2xf32>
    %1 = arith.truncf %0 : vector<64x2xf32> to vector<64x2xbf16>
    %c0_1 = arith.constant 0 : index
    %c0_2 = arith.constant 0 : index
    %2 = vector.load %arg5[%c0_1, %c0_2] : memref<2x10xbf16, #tpu.memory_space<vmem>>, vector<2x10xbf16>
    %cst = arith.constant dense<0.000000e+00> : vector<64x10xf32>
    %3 = tpu.matmul %1, %2, %cst {dimension_numbers = #tpu.dot_dimension_numbers<[1], [0], [0], [1], [0, 0, 1, 1], [], []>} : vector<64x2xbf16>, vector<2x10xbf16>, vector<64x10xf32> -> vector<64x10xf32>
    %c0_3 = arith.constant 0 : index
    %c0_4 = arith.constant 0 : index
    %4 = vector.load %arg6[%c0_3, %c0_4] : memref<1x10xf32, #tpu.memory_space<vmem>>, vector<1x10xf32>
    %5 = vector.broadcast %4 : vector<1x10xf32> to vector<64x10xf32>
    %6 = arith.addf %3, %5 : vector<64x10xf32>
    %cst_5 = arith.constant 0.000000e+00 : f32
    %7 = vector.broadcast %cst_5 : f32 to vector<64x10xf32>
    %8 = arith.maximumf %6, %7 : vector<64x10xf32>
    %c0_6 = arith.constant 0 : index
    %c0_7 = arith.constant 0 : index
    %9 = vector.load %arg1[%c0_6, %c0_7] : memref<64x2xf32, #tpu.memory_space<vmem>>, vector<64x2xf32>
    %10 = arith.truncf %9 : vector<64x2xf32> to vector<64x2xbf16>
    %c0_8 = arith.constant 0 : index
    %c0_9 = arith.constant 0 : index
    %11 = vector.load %arg7[%c0_8, %c0_9] : memref<2x10xbf16, #tpu.memory_space<vmem>>, vector<2x10xbf16>
    %cst_10 = arith.constant dense<0.000000e+00> : vector<64x10xf32>
    %12 = tpu.matmul %10, %11, %cst_10 {dimension_numbers = #tpu.dot_dimension_numbers<[1], [0], [0], [1], [0, 0, 1, 1], [], []>} : vector<64x2xbf16>, vector<2x10xbf16>, vector<64x10xf32> -> vector<64x10xf32>
    %c0_11 = arith.constant 0 : index
    %c0_12 = arith.constant 0 : index
    %13 = vector.load %arg8[%c0_11, %c0_12] : memref<1x10xf32, #tpu.memory_space<vmem>>, vector<1x10xf32>
    %14 = vector.broadcast %13 : vector<1x10xf32> to vector<64x10xf32>
    %15 = arith.addf %12, %14 : vector<64x10xf32>
    %cst_13 = arith.constant 0.000000e+00 : f32
    %16 = vector.broadcast %cst_13 : f32 to vector<64x10xf32>
    %17 = arith.maximumf %15, %16 : vector<64x10xf32>
    %c0_14 = arith.constant 0 : index
    %c0_15 = arith.constant 0 : index
    %18 = vector.load %arg2[%c0_14, %c0_15] : memref<64x1xf32, #tpu.memory_space<vmem>>, vector<64x1xf32>
    %c0_16 = arith.constant 0 : index
    %c0_17 = arith.constant 0 : index
    %19 = vector.load %arg9[%c0_16, %c0_17] : memref<1x5xf32, #tpu.memory_space<vmem>>, vector<1x5xf32>
    %20 = vector.broadcast %18 : vector<64x1xf32> to vector<64x5xf32>
    %21 = vector.broadcast %19 : vector<1x5xf32> to vector<64x5xf32>
    %22 = arith.mulf %20, %21 : vector<64x5xf32>
    %c0_18 = arith.constant 0 : index
    %c0_19 = arith.constant 0 : index
    %23 = vector.load %arg10[%c0_18, %c0_19] : memref<1x5xf32, #tpu.memory_space<vmem>>, vector<1x5xf32>
    %24 = vector.broadcast %23 : vector<1x5xf32> to vector<64x5xf32>
    %25 = arith.addf %22, %24 : vector<64x5xf32>
    %cst_20 = arith.constant 0.000000e+00 : f32
    %26 = vector.broadcast %cst_20 : f32 to vector<64x5xf32>
    %27 = arith.maximumf %25, %26 : vector<64x5xf32>
    %28 = arith.truncf %8 : vector<64x10xf32> to vector<64x10xbf16>
    %c0_21 = arith.constant 0 : index
    %c0_22 = arith.constant 0 : index
    %29 = vector.load %arg11[%c0_21, %c0_22] : memref<10x384xbf16, #tpu.memory_space<vmem>>, vector<10x384xbf16>
    %cst_23 = arith.constant dense<0.000000e+00> : vector<64x384xf32>
    %30 = tpu.matmul %28, %29, %cst_23 {dimension_numbers = #tpu.dot_dimension_numbers<[1], [0], [0], [1], [0, 0, 1, 1], [], []>} : vector<64x10xbf16>, vector<10x384xbf16>, vector<64x384xf32> -> vector<64x384xf32>
    %31 = arith.truncf %17 : vector<64x10xf32> to vector<64x10xbf16>
    %c0_24 = arith.constant 0 : index
    %c0_25 = arith.constant 0 : index
    %32 = vector.load %arg12[%c0_24, %c0_25] : memref<10x384xbf16, #tpu.memory_space<vmem>>, vector<10x384xbf16>
    %cst_26 = arith.constant dense<0.000000e+00> : vector<64x384xf32>
    %33 = tpu.matmul %31, %32, %cst_26 {dimension_numbers = #tpu.dot_dimension_numbers<[1], [0], [0], [1], [0, 0, 1, 1], [], []>} : vector<64x10xbf16>, vector<10x384xbf16>, vector<64x384xf32> -> vector<64x384xf32>
    %34 = arith.addf %30, %33 : vector<64x384xf32>
    %35 = arith.truncf %27 : vector<64x5xf32> to vector<64x5xbf16>
    %c0_27 = arith.constant 0 : index
    %c0_28 = arith.constant 0 : index
    %36 = vector.load %arg13[%c0_27, %c0_28] : memref<5x384xbf16, #tpu.memory_space<vmem>>, vector<5x384xbf16>
    %cst_29 = arith.constant dense<0.000000e+00> : vector<64x384xf32>
    %37 = tpu.matmul %35, %36, %cst_29 {dimension_numbers = #tpu.dot_dimension_numbers<[1], [0], [0], [1], [0, 0, 1, 1], [], []>} : vector<64x5xbf16>, vector<5x384xbf16>, vector<64x384xf32> -> vector<64x384xf32>
    %38 = arith.addf %34, %37 : vector<64x384xf32>
    %c0_30 = arith.constant 0 : index
    %c0_31 = arith.constant 0 : index
    %39 = vector.load %arg14[%c0_30, %c0_31] : memref<1x384xf32, #tpu.memory_space<vmem>>, vector<1x384xf32>
    %40 = vector.broadcast %39 : vector<1x384xf32> to vector<64x384xf32>
    %41 = arith.addf %38, %40 : vector<64x384xf32>
    %c0_32 = arith.constant 0 : index
    %c0_33 = arith.constant 0 : index
    %42 = vector.load %arg24[%c0_32, %c0_33] : memref<64x384xf32, #tpu.memory_space<vmem>>, vector<64x384xf32>
    tpu.vector_store %arg24[%c0_32, %c0_33], %41 {strides = array<i32>} : memref<64x384xf32, #tpu.memory_space<vmem>>, vector<64x384xf32>,
    %c0_34 = arith.constant 0 : index
    %c0_35 = arith.constant 0 : index
    %43 = vector.load %arg15[%c0_34, %c0_35] : memref<128x384xf32, #tpu.memory_space<vmem>>, vector<128x384xf32>
    %c0_36 = arith.constant 0 : index
    %c0_37 = arith.constant 0 : index
    %44 = vector.load %arg16[%c0_36, %c0_37] : memref<1x128xf32, #tpu.memory_space<vmem>>, vector<1x128xf32>
    %45 = vector.shape_cast %44 : vector<1x128xf32> to vector<1x128xf32>
    %46 = vector.broadcast %45 : vector<1x128xf32> to vector<8x128xf32>
    %c0_38 = arith.constant 0 : index
    %c0_39 = arith.constant 0 : index
    %47 = vector.load %arg3[%c0_38, %c0_39] : memref<8x128xf32, #tpu.memory_space<vmem>>, vector<8x128xf32>
    %c0_i32 = arith.constant 0 : i32
    %c8_i32 = arith.constant 8 : i32
    %48 = arith.muli %c0_i32, %c8_i32 : i32
    %49 = tpu.assume_multiple %48, 8 : i32
    %50 = arith.index_cast %49 : i32 to index
    %c0_40 = arith.constant 0 : index
    %51 = vector.load %arg24[%50, %c0_40] : memref<64x384xf32, #tpu.memory_space<vmem>>, vector<8x384xf32>
    %cst_41 = arith.constant dense<0.000000e+00> : vector<8x384xf32>
    %52 = tpu.matmul %47, %43, %cst_41 {dimension_numbers = #tpu.dot_dimension_numbers<[1], [0], [0], [1], [0, 0, 1, 1], [], []>} : vector<8x128xf32>, vector<128x384xf32>, vector<8x384xf32> -> vector<8x384xf32>
    %53 = vector.extract_strided_slice %51 {offsets = [0, 0], sizes = [8, 128], strides = [1, 1]} : vector<8x384xf32> to vector<8x128xf32>
    %54 = vector.extract_strided_slice %52 {offsets = [0, 0], sizes = [8, 128], strides = [1, 1]} : vector<8x384xf32> to vector<8x128xf32>
    %55 = arith.addf %53, %54 : vector<8x128xf32>
    %56 = arith.negf %55 : vector<8x128xf32>
    %57 = math.exp %56 : vector<8x128xf32>
    %cst_42 = arith.constant 1.000000e+00 : f32
    %58 = vector.broadcast %cst_42 : f32 to vector<8x128xf32>
    %59 = arith.addf %58, %57 : vector<8x128xf32>
    %60 = arith.divf %58, %59 : vector<8x128xf32>
    %61 = vector.extract_strided_slice %51 {offsets = [0, 128], sizes = [8, 128], strides = [1, 1]} : vector<8x384xf32> to vector<8x128xf32>
    %62 = vector.extract_strided_slice %52 {offsets = [0, 128], sizes = [8, 128], strides = [1, 1]} : vector<8x384xf32> to vector<8x128xf32>
    %63 = arith.addf %61, %62 : vector<8x128xf32>
    %64 = arith.negf %63 : vector<8x128xf32>
    %65 = math.exp %64 : vector<8x128xf32>
    %cst_43 = arith.constant 1.000000e+00 : f32
    %66 = vector.broadcast %cst_43 : f32 to vector<8x128xf32>
    %67 = arith.addf %66, %65 : vector<8x128xf32>
    %68 = arith.divf %66, %67 : vector<8x128xf32>
    %69 = vector.extract_strided_slice %51 {offsets = [0, 256], sizes = [8, 128], strides = [1, 1]} : vector<8x384xf32> to vector<8x128xf32>
    %70 = vector.extract_strided_slice %52 {offsets = [0, 256], sizes = [8, 128], strides = [1, 1]} : vector<8x384xf32> to vector<8x128xf32>
    %71 = arith.addf %70, %46 : vector<8x128xf32>
    %72 = arith.mulf %60, %71 : vector<8x128xf32>
    %73 = arith.addf %69, %72 : vector<8x128xf32>
    %74 = math.tanh %73 : vector<8x128xf32>
    %cst_44 = arith.constant 1.000000e+00 : f32
    %75 = vector.broadcast %cst_44 : f32 to vector<8x128xf32>
    %76 = arith.subf %75, %68 : vector<8x128xf32>
    %77 = arith.mulf %76, %74 : vector<8x128xf32>
    %78 = arith.mulf %68, %47 : vector<8x128xf32>
    %79 = arith.addf %77, %78 : vector<8x128xf32>
    %80 = arith.index_cast %49 : i32 to index
    %c0_45 = arith.constant 0 : index
    %81 = vector.load %arg19[%80, %c0_45] : memref<64x128xf32, #tpu.memory_space<vmem>>, vector<8x128xf32>
    tpu.vector_store %arg19[%80, %c0_45], %79 {strides = array<i32>} : memref<64x128xf32, #tpu.memory_space<vmem>>, vector<8x128xf32>,
    %c1_i32 = arith.constant 1 : i32
    %c8_i32_46 = arith.constant 8 : i32
    %82 = arith.muli %c1_i32, %c8_i32_46 : i32
    %83 = tpu.assume_multiple %82, 8 : i32
    %84 = arith.index_cast %83 : i32 to index
    %c0_47 = arith.constant 0 : index
    %85 = vector.load %arg24[%84, %c0_47] : memref<64x384xf32, #tpu.memory_space<vmem>>, vector<8x384xf32>
    %cst_48 = arith.constant dense<0.000000e+00> : vector<8x384xf32>
    %86 = tpu.matmul %79, %43, %cst_48 {dimension_numbers = #tpu.dot_dimension_numbers<[1], [0], [0], [1], [0, 0, 1, 1], [], []>} : vector<8x128xf32>, vector<128x384xf32>, vector<8x384xf32> -> vector<8x384xf32>
    %87 = vector.extract_strided_slice %85 {offsets = [0, 0], sizes = [8, 128], strides = [1, 1]} : vector<8x384xf32> to vector<8x128xf32>
    %88 = vector.extract_strided_slice %86 {offsets = [0, 0], sizes = [8, 128], strides = [1, 1]} : vector<8x384xf32> to vector<8x128xf32>
    %89 = arith.addf %87, %88 : vector<8x128xf32>
    %90 = arith.negf %89 : vector<8x128xf32>
    %91 = math.exp %90 : vector<8x128xf32>
    %cst_49 = arith.constant 1.000000e+00 : f32
    %92 = vector.broadcast %cst_49 : f32 to vector<8x128xf32>
    %93 = arith.addf %92, %91 : vector<8x128xf32>
    %94 = arith.divf %92, %93 : vector<8x128xf32>
    %95 = vector.extract_strided_slice %85 {offsets = [0, 128], sizes = [8, 128], strides = [1, 1]} : vector<8x384xf32> to vector<8x128xf32>
    %96 = vector.extract_strided_slice %86 {offsets = [0, 128], sizes = [8, 128], strides = [1, 1]} : vector<8x384xf32> to vector<8x128xf32>
    %97 = arith.addf %95, %96 : vector<8x128xf32>
    %98 = arith.negf %97 : vector<8x128xf32>
    %99 = math.exp %98 : vector<8x128xf32>
    %cst_50 = arith.constant 1.000000e+00 : f32
    %100 = vector.broadcast %cst_50 : f32 to vector<8x128xf32>
    %101 = arith.addf %100, %99 : vector<8x128xf32>
    %102 = arith.divf %100, %101 : vector<8x128xf32>
    %103 = vector.extract_strided_slice %85 {offsets = [0, 256], sizes = [8, 128], strides = [1, 1]} : vector<8x384xf32> to vector<8x128xf32>
    %104 = vector.extract_strided_slice %86 {offsets = [0, 256], sizes = [8, 128], strides = [1, 1]} : vector<8x384xf32> to vector<8x128xf32>
    %105 = arith.addf %104, %46 : vector<8x128xf32>
    %106 = arith.mulf %94, %105 : vector<8x128xf32>
    %107 = arith.addf %103, %106 : vector<8x128xf32>
    %108 = math.tanh %107 : vector<8x128xf32>
    %cst_51 = arith.constant 1.000000e+00 : f32
    %109 = vector.broadcast %cst_51 : f32 to vector<8x128xf32>
    %110 = arith.subf %109, %102 : vector<8x128xf32>
    %111 = arith.mulf %110, %108 : vector<8x128xf32>
    %112 = arith.mulf %102, %79 : vector<8x128xf32>
    %113 = arith.addf %111, %112 : vector<8x128xf32>
    %114 = arith.index_cast %83 : i32 to index
    %c0_52 = arith.constant 0 : index
    %115 = vector.load %arg19[%114, %c0_52] : memref<64x128xf32, #tpu.memory_space<vmem>>, vector<8x128xf32>
    tpu.vector_store %arg19[%114, %c0_52], %113 {strides = array<i32>} : memref<64x128xf32, #tpu.memory_space<vmem>>, vector<8x128xf32>,
    %c2_i32 = arith.constant 2 : i32
    %c8_i32_53 = arith.constant 8 : i32
    %116 = arith.muli %c2_i32, %c8_i32_53 : i32
    %117 = tpu.assume_multiple %116, 8 : i32
    %118 = arith.index_cast %117 : i32 to index
    %c0_54 = arith.constant 0 : index
    %119 = vector.load %arg24[%118, %c0_54] : memref<64x384xf32, #tpu.memory_space<vmem>>, vector<8x384xf32>
    %cst_55 = arith.constant dense<0.000000e+00> : vector<8x384xf32>
    %120 = tpu.matmul %113, %43, %cst_55 {dimension_numbers = #tpu.dot_dimension_numbers<[1], [0], [0], [1], [0, 0, 1, 1], [], []>} : vector<8x128xf32>, vector<128x384xf32>, vector<8x384xf32> -> vector<8x384xf32>
    %121 = vector.extract_strided_slice %119 {offsets = [0, 0], sizes = [8, 128], strides = [1, 1]} : vector<8x384xf32> to vector<8x128xf32>
    %122 = vector.extract_strided_slice %120 {offsets = [0, 0], sizes = [8, 128], strides = [1, 1]} : vector<8x384xf32> to vector<8x128xf32>
    %123 = arith.addf %121, %122 : vector<8x128xf32>
    %124 = arith.negf %123 : vector<8x128xf32>
    %125 = math.exp %124 : vector<8x128xf32>
    %cst_56 = arith.constant 1.000000e+00 : f32
    %126 = vector.broadcast %cst_56 : f32 to vector<8x128xf32>
    %127 = arith.addf %126, %125 : vector<8x128xf32>
    %128 = arith.divf %126, %127 : vector<8x128xf32>
    %129 = vector.extract_strided_slice %119 {offsets = [0, 128], sizes = [8, 128], strides = [1, 1]} : vector<8x384xf32> to vector<8x128xf32>
    %130 = vector.extract_strided_slice %120 {offsets = [0, 128], sizes = [8, 128], strides = [1, 1]} : vector<8x384xf32> to vector<8x128xf32>
    %131 = arith.addf %129, %130 : vector<8x128xf32>
    %132 = arith.negf %131 : vector<8x128xf32>
    %133 = math.exp %132 : vector<8x128xf32>
    %cst_57 = arith.constant 1.000000e+00 : f32
    %134 = vector.broadcast %cst_57 : f32 to vector<8x128xf32>
    %135 = arith.addf %134, %133 : vector<8x128xf32>
    %136 = arith.divf %134, %135 : vector<8x128xf32>
    %137 = vector.extract_strided_slice %119 {offsets = [0, 256], sizes = [8, 128], strides = [1, 1]} : vector<8x384xf32> to vector<8x128xf32>
    %138 = vector.extract_strided_slice %120 {offsets = [0, 256], sizes = [8, 128], strides = [1, 1]} : vector<8x384xf32> to vector<8x128xf32>
    %139 = arith.addf %138, %46 : vector<8x128xf32>
    %140 = arith.mulf %128, %139 : vector<8x128xf32>
    %141 = arith.addf %137, %140 : vector<8x128xf32>
    %142 = math.tanh %141 : vector<8x128xf32>
    %cst_58 = arith.constant 1.000000e+00 : f32
    %143 = vector.broadcast %cst_58 : f32 to vector<8x128xf32>
    %144 = arith.subf %143, %136 : vector<8x128xf32>
    %145 = arith.mulf %144, %142 : vector<8x128xf32>
    %146 = arith.mulf %136, %113 : vector<8x128xf32>
    %147 = arith.addf %145, %146 : vector<8x128xf32>
    %148 = arith.index_cast %117 : i32 to index
    %c0_59 = arith.constant 0 : index
    %149 = vector.load %arg19[%148, %c0_59] : memref<64x128xf32, #tpu.memory_space<vmem>>, vector<8x128xf32>
    tpu.vector_store %arg19[%148, %c0_59], %147 {strides = array<i32>} : memref<64x128xf32, #tpu.memory_space<vmem>>, vector<8x128xf32>,
    %c3_i32 = arith.constant 3 : i32
    %c8_i32_60 = arith.constant 8 : i32
    %150 = arith.muli %c3_i32, %c8_i32_60 : i32
    %151 = tpu.assume_multiple %150, 8 : i32
    %152 = arith.index_cast %151 : i32 to index
    %c0_61 = arith.constant 0 : index
    %153 = vector.load %arg24[%152, %c0_61] : memref<64x384xf32, #tpu.memory_space<vmem>>, vector<8x384xf32>
    %cst_62 = arith.constant dense<0.000000e+00> : vector<8x384xf32>
    %154 = tpu.matmul %147, %43, %cst_62 {dimension_numbers = #tpu.dot_dimension_numbers<[1], [0], [0], [1], [0, 0, 1, 1], [], []>} : vector<8x128xf32>, vector<128x384xf32>, vector<8x384xf32> -> vector<8x384xf32>
    %155 = vector.extract_strided_slice %153 {offsets = [0, 0], sizes = [8, 128], strides = [1, 1]} : vector<8x384xf32> to vector<8x128xf32>
    %156 = vector.extract_strided_slice %154 {offsets = [0, 0], sizes = [8, 128], strides = [1, 1]} : vector<8x384xf32> to vector<8x128xf32>
    %157 = arith.addf %155, %156 : vector<8x128xf32>
    %158 = arith.negf %157 : vector<8x128xf32>
    %159 = math.exp %158 : vector<8x128xf32>
    %cst_63 = arith.constant 1.000000e+00 : f32
    %160 = vector.broadcast %cst_63 : f32 to vector<8x128xf32>
    %161 = arith.addf %160, %159 : vector<8x128xf32>
    %162 = arith.divf %160, %161 : vector<8x128xf32>
    %163 = vector.extract_strided_slice %153 {offsets = [0, 128], sizes = [8, 128], strides = [1, 1]} : vector<8x384xf32> to vector<8x128xf32>
    %164 = vector.extract_strided_slice %154 {offsets = [0, 128], sizes = [8, 128], strides = [1, 1]} : vector<8x384xf32> to vector<8x128xf32>
    %165 = arith.addf %163, %164 : vector<8x128xf32>
    %166 = arith.negf %165 : vector<8x128xf32>
    %167 = math.exp %166 : vector<8x128xf32>
    %cst_64 = arith.constant 1.000000e+00 : f32
    %168 = vector.broadcast %cst_64 : f32 to vector<8x128xf32>
    %169 = arith.addf %168, %167 : vector<8x128xf32>
    %170 = arith.divf %168, %169 : vector<8x128xf32>
    %171 = vector.extract_strided_slice %153 {offsets = [0, 256], sizes = [8, 128], strides = [1, 1]} : vector<8x384xf32> to vector<8x128xf32>
    %172 = vector.extract_strided_slice %154 {offsets = [0, 256], sizes = [8, 128], strides = [1, 1]} : vector<8x384xf32> to vector<8x128xf32>
    %173 = arith.addf %172, %46 : vector<8x128xf32>
    %174 = arith.mulf %162, %173 : vector<8x128xf32>
    %175 = arith.addf %171, %174 : vector<8x128xf32>
    %176 = math.tanh %175 : vector<8x128xf32>
    %cst_65 = arith.constant 1.000000e+00 : f32
    %177 = vector.broadcast %cst_65 : f32 to vector<8x128xf32>
    %178 = arith.subf %177, %170 : vector<8x128xf32>
    %179 = arith.mulf %178, %176 : vector<8x128xf32>
    %180 = arith.mulf %170, %147 : vector<8x128xf32>
    %181 = arith.addf %179, %180 : vector<8x128xf32>
    %182 = arith.index_cast %151 : i32 to index
    %c0_66 = arith.constant 0 : index
    %183 = vector.load %arg19[%182, %c0_66] : memref<64x128xf32, #tpu.memory_space<vmem>>, vector<8x128xf32>
    tpu.vector_store %arg19[%182, %c0_66], %181 {strides = array<i32>} : memref<64x128xf32, #tpu.memory_space<vmem>>, vector<8x128xf32>,
    %c4_i32 = arith.constant 4 : i32
    %c8_i32_67 = arith.constant 8 : i32
    %184 = arith.muli %c4_i32, %c8_i32_67 : i32
    %185 = tpu.assume_multiple %184, 8 : i32
    %186 = arith.index_cast %185 : i32 to index
    %c0_68 = arith.constant 0 : index
    %187 = vector.load %arg24[%186, %c0_68] : memref<64x384xf32, #tpu.memory_space<vmem>>, vector<8x384xf32>
    %cst_69 = arith.constant dense<0.000000e+00> : vector<8x384xf32>
    %188 = tpu.matmul %181, %43, %cst_69 {dimension_numbers = #tpu.dot_dimension_numbers<[1], [0], [0], [1], [0, 0, 1, 1], [], []>} : vector<8x128xf32>, vector<128x384xf32>, vector<8x384xf32> -> vector<8x384xf32>
    %189 = vector.extract_strided_slice %187 {offsets = [0, 0], sizes = [8, 128], strides = [1, 1]} : vector<8x384xf32> to vector<8x128xf32>
    %190 = vector.extract_strided_slice %188 {offsets = [0, 0], sizes = [8, 128], strides = [1, 1]} : vector<8x384xf32> to vector<8x128xf32>
    %191 = arith.addf %189, %190 : vector<8x128xf32>
    %192 = arith.negf %191 : vector<8x128xf32>
    %193 = math.exp %192 : vector<8x128xf32>
    %cst_70 = arith.constant 1.000000e+00 : f32
    %194 = vector.broadcast %cst_70 : f32 to vector<8x128xf32>
    %195 = arith.addf %194, %193 : vector<8x128xf32>
    %196 = arith.divf %194, %195 : vector<8x128xf32>
    %197 = vector.extract_strided_slice %187 {offsets = [0, 128], sizes = [8, 128], strides = [1, 1]} : vector<8x384xf32> to vector<8x128xf32>
    %198 = vector.extract_strided_slice %188 {offsets = [0, 128], sizes = [8, 128], strides = [1, 1]} : vector<8x384xf32> to vector<8x128xf32>
    %199 = arith.addf %197, %198 : vector<8x128xf32>
    %200 = arith.negf %199 : vector<8x128xf32>
    %201 = math.exp %200 : vector<8x128xf32>
    %cst_71 = arith.constant 1.000000e+00 : f32
    %202 = vector.broadcast %cst_71 : f32 to vector<8x128xf32>
    %203 = arith.addf %202, %201 : vector<8x128xf32>
    %204 = arith.divf %202, %203 : vector<8x128xf32>
    %205 = vector.extract_strided_slice %187 {offsets = [0, 256], sizes = [8, 128], strides = [1, 1]} : vector<8x384xf32> to vector<8x128xf32>
    %206 = vector.extract_strided_slice %188 {offsets = [0, 256], sizes = [8, 128], strides = [1, 1]} : vector<8x384xf32> to vector<8x128xf32>
    %207 = arith.addf %206, %46 : vector<8x128xf32>
    %208 = arith.mulf %196, %207 : vector<8x128xf32>
    %209 = arith.addf %205, %208 : vector<8x128xf32>
    %210 = math.tanh %209 : vector<8x128xf32>
    %cst_72 = arith.constant 1.000000e+00 : f32
    %211 = vector.broadcast %cst_72 : f32 to vector<8x128xf32>
    %212 = arith.subf %211, %204 : vector<8x128xf32>
    %213 = arith.mulf %212, %210 : vector<8x128xf32>
    %214 = arith.mulf %204, %181 : vector<8x128xf32>
    %215 = arith.addf %213, %214 : vector<8x128xf32>
    %216 = arith.index_cast %185 : i32 to index
    %c0_73 = arith.constant 0 : index
    %217 = vector.load %arg19[%216, %c0_73] : memref<64x128xf32, #tpu.memory_space<vmem>>, vector<8x128xf32>
    tpu.vector_store %arg19[%216, %c0_73], %215 {strides = array<i32>} : memref<64x128xf32, #tpu.memory_space<vmem>>, vector<8x128xf32>,
    %c5_i32 = arith.constant 5 : i32
    %c8_i32_74 = arith.constant 8 : i32
    %218 = arith.muli %c5_i32, %c8_i32_74 : i32
    %219 = tpu.assume_multiple %218, 8 : i32
    %220 = arith.index_cast %219 : i32 to index
    %c0_75 = arith.constant 0 : index
    %221 = vector.load %arg24[%220, %c0_75] : memref<64x384xf32, #tpu.memory_space<vmem>>, vector<8x384xf32>
    %cst_76 = arith.constant dense<0.000000e+00> : vector<8x384xf32>
    %222 = tpu.matmul %215, %43, %cst_76 {dimension_numbers = #tpu.dot_dimension_numbers<[1], [0], [0], [1], [0, 0, 1, 1], [], []>} : vector<8x128xf32>, vector<128x384xf32>, vector<8x384xf32> -> vector<8x384xf32>
    %223 = vector.extract_strided_slice %221 {offsets = [0, 0], sizes = [8, 128], strides = [1, 1]} : vector<8x384xf32> to vector<8x128xf32>
    %224 = vector.extract_strided_slice %222 {offsets = [0, 0], sizes = [8, 128], strides = [1, 1]} : vector<8x384xf32> to vector<8x128xf32>
    %225 = arith.addf %223, %224 : vector<8x128xf32>
    %226 = arith.negf %225 : vector<8x128xf32>
    %227 = math.exp %226 : vector<8x128xf32>
    %cst_77 = arith.constant 1.000000e+00 : f32
    %228 = vector.broadcast %cst_77 : f32 to vector<8x128xf32>
    %229 = arith.addf %228, %227 : vector<8x128xf32>
    %230 = arith.divf %228, %229 : vector<8x128xf32>
    %231 = vector.extract_strided_slice %221 {offsets = [0, 128], sizes = [8, 128], strides = [1, 1]} : vector<8x384xf32> to vector<8x128xf32>
    %232 = vector.extract_strided_slice %222 {offsets = [0, 128], sizes = [8, 128], strides = [1, 1]} : vector<8x384xf32> to vector<8x128xf32>
    %233 = arith.addf %231, %232 : vector<8x128xf32>
    %234 = arith.negf %233 : vector<8x128xf32>
    %235 = math.exp %234 : vector<8x128xf32>
    %cst_78 = arith.constant 1.000000e+00 : f32
    %236 = vector.broadcast %cst_78 : f32 to vector<8x128xf32>
    %237 = arith.addf %236, %235 : vector<8x128xf32>
    %238 = arith.divf %236, %237 : vector<8x128xf32>
    %239 = vector.extract_strided_slice %221 {offsets = [0, 256], sizes = [8, 128], strides = [1, 1]} : vector<8x384xf32> to vector<8x128xf32>
    %240 = vector.extract_strided_slice %222 {offsets = [0, 256], sizes = [8, 128], strides = [1, 1]} : vector<8x384xf32> to vector<8x128xf32>
    %241 = arith.addf %240, %46 : vector<8x128xf32>
    %242 = arith.mulf %230, %241 : vector<8x128xf32>
    %243 = arith.addf %239, %242 : vector<8x128xf32>
    %244 = math.tanh %243 : vector<8x128xf32>
    %cst_79 = arith.constant 1.000000e+00 : f32
    %245 = vector.broadcast %cst_79 : f32 to vector<8x128xf32>
    %246 = arith.subf %245, %238 : vector<8x128xf32>
    %247 = arith.mulf %246, %244 : vector<8x128xf32>
    %248 = arith.mulf %238, %215 : vector<8x128xf32>
    %249 = arith.addf %247, %248 : vector<8x128xf32>
    %250 = arith.index_cast %219 : i32 to index
    %c0_80 = arith.constant 0 : index
    %251 = vector.load %arg19[%250, %c0_80] : memref<64x128xf32, #tpu.memory_space<vmem>>, vector<8x128xf32>
    tpu.vector_store %arg19[%250, %c0_80], %249 {strides = array<i32>} : memref<64x128xf32, #tpu.memory_space<vmem>>, vector<8x128xf32>,
    %c6_i32 = arith.constant 6 : i32
    %c8_i32_81 = arith.constant 8 : i32
    %252 = arith.muli %c6_i32, %c8_i32_81 : i32
    %253 = tpu.assume_multiple %252, 8 : i32
    %254 = arith.index_cast %253 : i32 to index
    %c0_82 = arith.constant 0 : index
    %255 = vector.load %arg24[%254, %c0_82] : memref<64x384xf32, #tpu.memory_space<vmem>>, vector<8x384xf32>
    %cst_83 = arith.constant dense<0.000000e+00> : vector<8x384xf32>
    %256 = tpu.matmul %249, %43, %cst_83 {dimension_numbers = #tpu.dot_dimension_numbers<[1], [0], [0], [1], [0, 0, 1, 1], [], []>} : vector<8x128xf32>, vector<128x384xf32>, vector<8x384xf32> -> vector<8x384xf32>
    %257 = vector.extract_strided_slice %255 {offsets = [0, 0], sizes = [8, 128], strides = [1, 1]} : vector<8x384xf32> to vector<8x128xf32>
    %258 = vector.extract_strided_slice %256 {offsets = [0, 0], sizes = [8, 128], strides = [1, 1]} : vector<8x384xf32> to vector<8x128xf32>
    %259 = arith.addf %257, %258 : vector<8x128xf32>
    %260 = arith.negf %259 : vector<8x128xf32>
    %261 = math.exp %260 : vector<8x128xf32>
    %cst_84 = arith.constant 1.000000e+00 : f32
    %262 = vector.broadcast %cst_84 : f32 to vector<8x128xf32>
    %263 = arith.addf %262, %261 : vector<8x128xf32>
    %264 = arith.divf %262, %263 : vector<8x128xf32>
    %265 = vector.extract_strided_slice %255 {offsets = [0, 128], sizes = [8, 128], strides = [1, 1]} : vector<8x384xf32> to vector<8x128xf32>
    %266 = vector.extract_strided_slice %256 {offsets = [0, 128], sizes = [8, 128], strides = [1, 1]} : vector<8x384xf32> to vector<8x128xf32>
    %267 = arith.addf %265, %266 : vector<8x128xf32>
    %268 = arith.negf %267 : vector<8x128xf32>
    %269 = math.exp %268 : vector<8x128xf32>
    %cst_85 = arith.constant 1.000000e+00 : f32
    %270 = vector.broadcast %cst_85 : f32 to vector<8x128xf32>
    %271 = arith.addf %270, %269 : vector<8x128xf32>
    %272 = arith.divf %270, %271 : vector<8x128xf32>
    %273 = vector.extract_strided_slice %255 {offsets = [0, 256], sizes = [8, 128], strides = [1, 1]} : vector<8x384xf32> to vector<8x128xf32>
    %274 = vector.extract_strided_slice %256 {offsets = [0, 256], sizes = [8, 128], strides = [1, 1]} : vector<8x384xf32> to vector<8x128xf32>
    %275 = arith.addf %274, %46 : vector<8x128xf32>
    %276 = arith.mulf %264, %275 : vector<8x128xf32>
    %277 = arith.addf %273, %276 : vector<8x128xf32>
    %278 = math.tanh %277 : vector<8x128xf32>
    %cst_86 = arith.constant 1.000000e+00 : f32
    %279 = vector.broadcast %cst_86 : f32 to vector<8x128xf32>
    %280 = arith.subf %279, %272 : vector<8x128xf32>
    %281 = arith.mulf %280, %278 : vector<8x128xf32>
    %282 = arith.mulf %272, %249 : vector<8x128xf32>
    %283 = arith.addf %281, %282 : vector<8x128xf32>
    %284 = arith.index_cast %253 : i32 to index
    %c0_87 = arith.constant 0 : index
    %285 = vector.load %arg19[%284, %c0_87] : memref<64x128xf32, #tpu.memory_space<vmem>>, vector<8x128xf32>
    tpu.vector_store %arg19[%284, %c0_87], %283 {strides = array<i32>} : memref<64x128xf32, #tpu.memory_space<vmem>>, vector<8x128xf32>,
    %c7_i32 = arith.constant 7 : i32
    %c8_i32_88 = arith.constant 8 : i32
    %286 = arith.muli %c7_i32, %c8_i32_88 : i32
    %287 = tpu.assume_multiple %286, 8 : i32
    %288 = arith.index_cast %287 : i32 to index
    %c0_89 = arith.constant 0 : index
    %289 = vector.load %arg24[%288, %c0_89] : memref<64x384xf32, #tpu.memory_space<vmem>>, vector<8x384xf32>
    %cst_90 = arith.constant dense<0.000000e+00> : vector<8x384xf32>
    %290 = tpu.matmul %283, %43, %cst_90 {dimension_numbers = #tpu.dot_dimension_numbers<[1], [0], [0], [1], [0, 0, 1, 1], [], []>} : vector<8x128xf32>, vector<128x384xf32>, vector<8x384xf32> -> vector<8x384xf32>
    %291 = vector.extract_strided_slice %289 {offsets = [0, 0], sizes = [8, 128], strides = [1, 1]} : vector<8x384xf32> to vector<8x128xf32>
    %292 = vector.extract_strided_slice %290 {offsets = [0, 0], sizes = [8, 128], strides = [1, 1]} : vector<8x384xf32> to vector<8x128xf32>
    %293 = arith.addf %291, %292 : vector<8x128xf32>
    %294 = arith.negf %293 : vector<8x128xf32>
    %295 = math.exp %294 : vector<8x128xf32>
    %cst_91 = arith.constant 1.000000e+00 : f32
    %296 = vector.broadcast %cst_91 : f32 to vector<8x128xf32>
    %297 = arith.addf %296, %295 : vector<8x128xf32>
    %298 = arith.divf %296, %297 : vector<8x128xf32>
    %299 = vector.extract_strided_slice %289 {offsets = [0, 128], sizes = [8, 128], strides = [1, 1]} : vector<8x384xf32> to vector<8x128xf32>
    %300 = vector.extract_strided_slice %290 {offsets = [0, 128], sizes = [8, 128], strides = [1, 1]} : vector<8x384xf32> to vector<8x128xf32>
    %301 = arith.addf %299, %300 : vector<8x128xf32>
    %302 = arith.negf %301 : vector<8x128xf32>
    %303 = math.exp %302 : vector<8x128xf32>
    %cst_92 = arith.constant 1.000000e+00 : f32
    %304 = vector.broadcast %cst_92 : f32 to vector<8x128xf32>
    %305 = arith.addf %304, %303 : vector<8x128xf32>
    %306 = arith.divf %304, %305 : vector<8x128xf32>
    %307 = vector.extract_strided_slice %289 {offsets = [0, 256], sizes = [8, 128], strides = [1, 1]} : vector<8x384xf32> to vector<8x128xf32>
    %308 = vector.extract_strided_slice %290 {offsets = [0, 256], sizes = [8, 128], strides = [1, 1]} : vector<8x384xf32> to vector<8x128xf32>
    %309 = arith.addf %308, %46 : vector<8x128xf32>
    %310 = arith.mulf %298, %309 : vector<8x128xf32>
    %311 = arith.addf %307, %310 : vector<8x128xf32>
    %312 = math.tanh %311 : vector<8x128xf32>
    %cst_93 = arith.constant 1.000000e+00 : f32
    %313 = vector.broadcast %cst_93 : f32 to vector<8x128xf32>
    %314 = arith.subf %313, %306 : vector<8x128xf32>
    %315 = arith.mulf %314, %312 : vector<8x128xf32>
    %316 = arith.mulf %306, %283 : vector<8x128xf32>
    %317 = arith.addf %315, %316 : vector<8x128xf32>
    %318 = arith.index_cast %287 : i32 to index
    %c0_94 = arith.constant 0 : index
    %319 = vector.load %arg19[%318, %c0_94] : memref<64x128xf32, #tpu.memory_space<vmem>>, vector<8x128xf32>
    tpu.vector_store %arg19[%318, %c0_94], %317 {strides = array<i32>} : memref<64x128xf32, #tpu.memory_space<vmem>>, vector<8x128xf32>,
    %c8_i32_95 = arith.constant 8 : i32
    %c0_96 = arith.constant 0 : index
    %c0_97 = arith.constant 0 : index
    %320 = vector.load %arg23[%c0_96, %c0_97] : memref<8x128xf32, #tpu.memory_space<vmem>>, vector<8x128xf32>
    tpu.vector_store %arg23[%c0_96, %c0_97], %317 {strides = array<i32>} : memref<8x128xf32, #tpu.memory_space<vmem>>, vector<8x128xf32>,
    %c0_98 = arith.constant 0 : index
    %c0_99 = arith.constant 0 : index
    %321 = vector.load %arg19[%c0_98, %c0_99] : memref<64x128xf32, #tpu.memory_space<vmem>>, vector<64x128xf32>
    %322 = arith.truncf %321 : vector<64x128xf32> to vector<64x128xbf16>
    %c0_100 = arith.constant 0 : index
    %c0_101 = arith.constant 0 : index
    %323 = vector.load %arg17[%c0_100, %c0_101] : memref<128x256xbf16, #tpu.memory_space<vmem>>, vector<128x256xbf16>
    %cst_102 = arith.constant dense<0.000000e+00> : vector<64x256xf32>
    %324 = tpu.matmul %322, %323, %cst_102 {dimension_numbers = #tpu.dot_dimension_numbers<[1], [0], [0], [1], [0, 0, 1, 1], [], []>} : vector<64x128xbf16>, vector<128x256xbf16>, vector<64x256xf32> -> vector<64x256xf32>
    %c0_103 = arith.constant 0 : index
    %c0_104 = arith.constant 0 : index
    %325 = vector.load %arg18[%c0_103, %c0_104] : memref<1x256xf32, #tpu.memory_space<vmem>>, vector<1x256xf32>
    %326 = vector.broadcast %325 : vector<1x256xf32> to vector<64x256xf32>
    %327 = arith.addf %324, %326 : vector<64x256xf32>
    %328 = vector.extract_strided_slice %327 {offsets = [0, 0], sizes = [64, 128], strides = [1, 1]} : vector<64x256xf32> to vector<64x128xf32>
    %329 = vector.extract_strided_slice %327 {offsets = [0, 128], sizes = [64, 128], strides = [1, 1]} : vector<64x256xf32> to vector<64x128xf32>
    %c0_105 = arith.constant 0 : index
    %c0_106 = arith.constant 0 : index
    %330 = vector.load %arg20[%c0_105, %c0_106] : memref<64x128xf32, #tpu.memory_space<vmem>>, vector<64x128xf32>
    tpu.vector_store %arg20[%c0_105, %c0_106], %328 {strides = array<i32>} : memref<64x128xf32, #tpu.memory_space<vmem>>, vector<64x128xf32>,
    %c0_107 = arith.constant 0 : index
    %c0_108 = arith.constant 0 : index
    %331 = vector.load %arg21[%c0_107, %c0_108] : memref<64x128xf32, #tpu.memory_space<vmem>>, vector<64x128xf32>
    tpu.vector_store %arg21[%c0_107, %c0_108], %329 {strides = array<i32>} : memref<64x128xf32, #tpu.memory_space<vmem>>, vector<64x128xf32>,
    %c0_109 = arith.constant 0 : index
    %c0_110 = arith.constant 0 : index
    %332 = vector.load %arg4[%c0_109, %c0_110] : memref<64x128xf32, #tpu.memory_space<vmem>>, vector<64x128xf32>
    %cst_111 = arith.constant 5.000000e-01 : f32
    %333 = vector.broadcast %cst_111 : f32 to vector<64x128xf32>
    %334 = arith.mulf %333, %329 : vector<64x128xf32>
    %335 = math.exp %334 : vector<64x128xf32>
    %336 = arith.mulf %332, %335 : vector<64x128xf32>
    %337 = arith.addf %328, %336 : vector<64x128xf32>
    %c0_112 = arith.constant 0 : index
    %c0_113 = arith.constant 0 : index
    %338 = vector.load %arg22[%c0_112, %c0_113] : memref<64x128xf32, #tpu.memory_space<vmem>>, vector<64x128xf32>
    tpu.vector_store %arg22[%c0_112, %c0_113], %337 {strides = array<i32>} : memref<64x128xf32, #tpu.memory_space<vmem>>, vector<64x128xf32>,
    return
  }
}

</mosaic_0001>

<bundles_post_ra>
// kernel: tpu_custom_call.1
= control target key start
LH: loop header
LB: loop body
LE: loop exit
PB: predicated region body
PF: predicated region fallthrough
CT: control target
= control target key end

     0   :  { %s5562_s0 = inlined_call_operand.vmem [shape: f32[64,2], index: 0, kind: input, shape index: {}]   ;;  %s5563_s1 = inlined_call_operand.vmem [shape: f32[64,2], index: 1, kind: input, shape index: {}]   ;;  %s5564_s2 = inlined_call_operand.vmem [shape: f32[64,1], index: 2, kind: input, shape index: {}]   ;;  %s5565_s3 = inlined_call_operand.hbm [shape: f32[8,128], index: 3, kind: input, shape index: {}]   ;;  %s5566_s4 = inlined_call_operand.vmem [shape: f32[64,128], index: 4, kind: input, shape index: {}]   ;;  %s5567_s5 = inlined_call_operand.hbm [shape: bf16[2,10], index: 5, kind: input, shape index: {}]   ;;  %s5568_s6 = inlined_call_operand.hbm [shape: f32[1,10], index: 6, kind: input, shape index: {}]   ;;  %s5569_s7 = inlined_call_operand.hbm [shape: bf16[2,10], index: 7, kind: input, shape index: {}]   ;;  %s5570_s8 = inlined_call_operand.hbm [shape: f32[1,10], index: 8, kind: input, shape index: {}]   ;;  %s5571_s9 = inlined_call_operand.hbm [shape: f32[1,5], index: 9, kind: input, shape index: {}]   ;;  %s5572_s10 = inlined_call_operand.hbm [shape: f32[1,5], index: 10, kind: input, shape index: {}]   ;;  %s5573_s11 = inlined_call_operand.vmem [shape: bf16[10,384], index: 11, kind: input, shape index: {}]   ;;  %s5574_s12 = inlined_call_operand.vmem [shape: bf16[10,384], index: 12, kind: input, shape index: {}]   ;;  %s5575_s13 = inlined_call_operand.vmem [shape: bf16[5,384], index: 13, kind: input, shape index: {}]   ;;  %s5576_s14 = inlined_call_operand.vmem [shape: f32[1,384], index: 14, kind: input, shape index: {}]   ;;  %s5577_s15 = inlined_call_operand.hbm [shape: f32[128,384], index: 15, kind: input, shape index: {}]   ;;  %s5578_s16 = inlined_call_operand.hbm [shape: f32[1,128], index: 16, kind: input, shape index: {}]   ;;  %s5579_s17 = inlined_call_operand.vmem [shape: bf16[128,256], index: 17, kind: input, shape index: {}]   ;;  %s5580_s18 = inlined_call_operand.vmem [shape: f32[1,256], index: 18, kind: input, shape index: {}]   ;;  %s5581_s19 = inlined_call_operand.hbm [shape: f32[64,128], index: 19, kind: output, shape index: {0}]   ;;  %s5582_s20 = inlined_call_operand.hbm [shape: f32[64,128], index: 20, kind: output, shape index: {1}]   ;;  %s5583_s21 = inlined_call_operand.hbm [shape: f32[64,128], index: 21, kind: output, shape index: {2}]   ;;  %s5584_s22 = inlined_call_operand.hbm [shape: f32[64,128], index: 22, kind: output, shape index: {3}]   ;;  %s5585_s23 = inlined_call_operand.hbm [shape: f32[8,128], index: 23, kind: output, shape index: {4}]  }
   0x1   :  { %5603 = sst [smem:[#allocation34_spill]] %s5562_s0 }
   0x2   :  { %5604 = sst [smem:[#allocation35_spill]] %s5563_s1 }
   0x3   :  { %5605 = sst [smem:[#allocation36_spill]] %s5564_s2 }
   0x4   :  { %5606 = sst [smem:[#allocation37_spill]] %s5565_s3 }
   0x5   :  { %5607 = sst [smem:[#allocation38_spill]] %s5566_s4 }
   0x6   :  { %5608 = sst [smem:[#allocation39_spill]] %s5567_s5 }
   0x7   :  { %5609 = sst [smem:[#allocation40_spill]] %s5568_s6 }
   0x8   :  { %5610 = sst [smem:[#allocation41_spill]] %s5569_s7 }
   0x9   :  { %5611 = sst [smem:[#allocation42_spill]] %s5585_s23 }
   0xa   :  { %29 = vsyncpa [#allocation4], 0 }
   0xb   :  { %30 = vsyncpa [#allocation7], 0 }
   0xc   :  { %31 = vsyncpa [#allocation10], 0 }
   0xd   :  { %32 = vsyncpa [#allocation13], 0 }
   0xe   :  { %33 = vsyncpa [#allocation16], 0 }
   0xf   :  { %34 = vsyncpa [#allocation5], 0 }
  0x10   :  { %35 = vsyncpa [#allocation20], 0 }
  0x11   :  { %36 = vsyncpa [#allocation23], 0  ;;  %s4438_s4 = smov [#allocation6]   ;;  %s4439_s24 = smov [#allocation9]  }
  0x12   :  { %s61_s30 = sshll.u32 %s4438_s4, 4  ;;  %s81_s25 = sshll.u32 %s4439_s24, 4  ;;  %s62_s30 = int_to_ptr.vmem [resolvable:$true] %s61_s30  ;;  %s82_s25 = int_to_ptr.vmem [resolvable:$true] %s81_s25 }
  0x13   :  { %s5612_s26 = sld [smem:[#allocation39_spill]] }
  0x19   :  { %s4114_s2 = scalar_lea.hbm %s5612_s26, 16 }
  0x1a   :  { %p4115_p0 = scmp.ne.s32.totalorder %s5612_s26, %s4114_s2  ;;  %p4118_p1 = scmp.lt.u32.totalorder %s4114_s2, %s5612_s26 }
  0x1c   :  { %p4120_p2 = pnand %p4118_p1, %p4115_p0 }
  0x1e   :  { %4123 = shalt.err (!%p4120_p2)
}
  0x1f   :  { %s4124_s29 = scalar_lea.vmem %s62_s30, 16  ;;  %s4128_s3 = scalar_lea.vmem %s62_s30, 32 }
  0x20   :  { %p4125_p3 = scmp.ne.s32.totalorder %s62_s30, %s4124_s29  ;;  %p4129_p4 = scmp.lt.s32.totalorder %s62_s30, %s62_s30 }
  0x21   :  { %p4130_p5 = scmp.lt.s32.totalorder %s4128_s3, %s4124_s29 }
  0x23   :  { %p4131_p6 = por %p4130_p5, %p4129_p4 }
  0x25   :  { %p4132_p7 = pnand %p4131_p6, %p4125_p3 }
  0x27   :  { %4135 = shalt.err (!%p4132_p7)
}
  0x28   :  { %64 = dma.hbm_to_vmem [thread:$0]  %s5612_s26, 16, %s62_s30, [#allocation7]  }
  0x29   :  { %s5613_s1 = sld [smem:[#allocation41_spill]] }
  0x2f   :  { %s4136_s6 = scalar_lea.hbm %s5613_s1, 16 }
  0x30   :  { %p4137_p8 = scmp.ne.s32.totalorder %s5613_s1, %s4136_s6  ;;  %p4140_p9 = scmp.lt.u32.totalorder %s4136_s6, %s5613_s1 }
  0x32   :  { %p4142_p10 = pnand %p4140_p9, %p4137_p8 }
  0x34   :  { %4145 = shalt.err (!%p4142_p10)
}
  0x35   :  { %s4146_s29 = scalar_lea.vmem %s82_s25, 16  ;;  %s4150_s3 = scalar_lea.vmem %s82_s25, 32 }
  0x36   :  { %p4147_p11 = scmp.ne.s32.totalorder %s82_s25, %s4146_s29  ;;  %p4151_p12 = scmp.lt.s32.totalorder %s82_s25, %s82_s25 }
  0x37   :  { %p4152_p13 = scmp.lt.s32.totalorder %s4150_s3, %s4146_s29 }
  0x39   :  { %p4153_p0 = por %p4152_p13, %p4151_p12 }
  0x3b   :  { %p4154_p1 = pnand %p4153_p0, %p4147_p11 }
  0x3d   :  { %4157 = shalt.err (!%p4154_p1)
}
  0x3e   :  { %84 = dma.hbm_to_vmem [thread:$0]  %s5613_s1, 16, %s82_s25, [#allocation10]  }
  0x3f   :  { %s4440_s0 = smov [#allocation12]   ;;  %s4441_s24 = smov [#allocation15]  }
  0x40   :  { %s101_s4 = sshll.u32 %s4440_s0, 4  ;;  %s128_s5 = sshll.u32 %s4441_s24, 4  ;;  %s102_s4 = int_to_ptr.vmem [resolvable:$true] %s101_s4  ;;  %s4605_s5 = int_to_ptr.vmem [resolvable:$true] %s128_s5 }
  0x41   :  { %s4158_s2 = scalar_lea.hbm %s5571_s9, 16 }
  0x42   :  { %p4159_p2 = scmp.ne.s32.totalorder %s5571_s9, %s4158_s2  ;;  %p4162_p3 = scmp.lt.u32.totalorder %s4158_s2, %s5571_s9 }
  0x44   :  { %p4164_p4 = pnand %p4162_p3, %p4159_p2 }
  0x46   :  { %4167 = shalt.err (!%p4164_p4)
}
  0x47   :  { %s4168_s25 = scalar_lea.vmem %s102_s4, 16  ;;  %s4172_s1 = scalar_lea.vmem %s102_s4, 32 }
  0x48   :  { %p4169_p5 = scmp.ne.s32.totalorder %s102_s4, %s4168_s25  ;;  %p4173_p6 = scmp.lt.s32.totalorder %s102_s4, %s102_s4 }
  0x49   :  { %p4174_p7 = scmp.lt.s32.totalorder %s4172_s1, %s4168_s25 }
  0x4b   :  { %p4175_p8 = por %p4174_p7, %p4173_p6 }
  0x4d   :  { %p4176_p9 = pnand %p4175_p8, %p4169_p5 }
  0x4f   :  { %4179 = shalt.err (!%p4176_p9)
}
  0x50   :  { %104 = dma.hbm_to_vmem [thread:$0]  %s5571_s9, 16, %s102_s4, [#allocation13]  }
  0x51   :  { %s4180_s6 = scalar_lea.hbm %s5577_s15, 6144 }
  0x52   :  { %p4181_p10 = scmp.ne.s32.totalorder %s5577_s15, %s4180_s6  ;;  %p4184_p11 = scmp.lt.u32.totalorder %s4180_s6, %s5577_s15 }
  0x54   :  { %p4186_p12 = pnand %p4184_p11, %p4181_p10 }
  0x56   :  { %4189 = shalt.err (!%p4186_p12)
}
  0x57   :  { %s4190_s29 = scalar_lea.vmem %s4605_s5, 6144  ;;  %p4195_p0 = scmp.lt.s32.totalorder %s4605_s5, %s4605_s5 }
  0x58   :  { %p4191_p13 = scmp.ne.s32.totalorder %s4605_s5, %s4190_s29  ;;  %p4196_p1 = scmp.lt.s32.totalorder %s4190_s29, %s4190_s29 }
  0x5a   :  { %p4197_p2 = por %p4196_p1, %p4195_p0 }
  0x5c   :  { %p4198_p3 = pnand %p4197_p2, %p4191_p13 }
  0x5e   :  { %4201 = shalt.err (!%p4198_p3)
}
  0x5f   :  { %s4442_s9 = smov 384   ;;  %s4443_s4 = smov 24  }
  0x60   :  { %134 = dma.hbm_to_vmem [thread:$0]  %s5577_s15, 6144, %s4605_s5, [#allocation16], %s4442_s9, %s4442_s9, %s4443_s4  }
  0x61   :  { %s4444_s1 = smov [#allocation3]   ;;  %s4445_s26 = smov [#allocation8]  }
  0x62   :  { %s49_s30 = sshll.u32 %s4444_s1, 4  ;;  %s71_s0 = sshll.u32 %s4445_s26, 4  ;;  %s50_s30 = int_to_ptr.vmem [resolvable:$true] %s49_s30  ;;  %s72_s0 = int_to_ptr.vmem [resolvable:$true] %s71_s0 }
  0x63   :  { %s5614_s27 = sld [smem:[#allocation37_spill]] }
  0x69   :  { %s4202_s2 = scalar_lea.hbm %s5614_s27, 128 }
  0x6a   :  { %p4203_p4 = scmp.ne.s32.totalorder %s5614_s27, %s4202_s2  ;;  %p4206_p5 = scmp.lt.u32.totalorder %s4202_s2, %s5614_s27 }
  0x6c   :  { %p4208_p6 = pnand %p4206_p5, %p4203_p4 }
  0x6e   :  { %4211 = shalt.err (!%p4208_p6)
}
  0x6f   :  { %s4212_s15 = scalar_lea.vmem %s50_s30, 128  ;;  %p4217_p8 = scmp.lt.s32.totalorder %s50_s30, %s50_s30 }
  0x70   :  { %p4213_p7 = scmp.ne.s32.totalorder %s50_s30, %s4212_s15  ;;  %p4218_p9 = scmp.lt.s32.totalorder %s4212_s15, %s4212_s15 }
  0x72   :  { %p4219_p10 = por %p4218_p9, %p4217_p8 }
  0x74   :  { %p4220_p11 = pnand %p4219_p10, %p4213_p7 }
  0x76   :  { %4223 = shalt.err (!%p4220_p11)
}
  0x77   :  { %52 = dma.hbm_to_vmem [thread:$0]  %s5614_s27, 128, %s50_s30, [#allocation4]  }
  0x78   :  { %s5615_s25 = sld [smem:[#allocation40_spill]] }
  0x7e   :  { %s4224_s1 = scalar_lea.hbm %s5615_s25, 16 }
  0x7f   :  { %p4225_p12 = scmp.ne.s32.totalorder %s5615_s25, %s4224_s1  ;;  %p4228_p13 = scmp.lt.u32.totalorder %s4224_s1, %s5615_s25 }
  0x81   :  { %p4230_p0 = pnand %p4228_p13, %p4225_p12 }
  0x83   :  { %4233 = shalt.err (!%p4230_p0)
}
  0x84   :  { %s4234_s2 = scalar_lea.vmem %s72_s0, 16  ;;  %s4238_s7 = scalar_lea.vmem %s72_s0, 32 }
  0x85   :  { %p4235_p1 = scmp.ne.s32.totalorder %s72_s0, %s4234_s2  ;;  %p4239_p2 = scmp.lt.s32.totalorder %s72_s0, %s72_s0 }
  0x86   :  { %p4240_p3 = scmp.lt.s32.totalorder %s4238_s7, %s4234_s2 }
  0x88   :  { %p4241_p4 = por %p4240_p3, %p4239_p2 }
  0x8a   :  { %p4242_p5 = pnand %p4241_p4, %p4235_p1 }
  0x8c   :  { %4245 = shalt.err (!%p4242_p5)
}
  0x8d   :  { %74 = dma.hbm_to_vmem [thread:$0]  %s5615_s25, 16, %s72_s0, [#allocation7]  }
  0x8e   :  { %s4446_s28 = smov [#allocation11]   ;;  %s4447_s15 = smov [#allocation14]  }
  0x8f   :  { %s91_s29 = sshll.u32 %s4446_s28, 4  ;;  %s111_s5 = sshll.u32 %s4447_s15, 4  ;;  %s92_s29 = int_to_ptr.vmem [resolvable:$true] %s91_s29  ;;  %s112_s5 = int_to_ptr.vmem [resolvable:$true] %s111_s5 }
  0x90   :  { %s4246_s3 = scalar_lea.hbm %s5570_s8, 16 }
  0x91   :  { %p4247_p6 = scmp.ne.s32.totalorder %s5570_s8, %s4246_s3  ;;  %p4250_p7 = scmp.lt.u32.totalorder %s4246_s3, %s5570_s8 }
  0x93   :  { %p4252_p8 = pnand %p4250_p7, %p4247_p6 }
  0x95   :  { %4255 = shalt.err (!%p4252_p8)
}
  0x96   :  { %s4256_s0 = scalar_lea.vmem %s92_s29, 16  ;;  %s4260_s25 = scalar_lea.vmem %s92_s29, 32 }
  0x97   :  { %p4257_p9 = scmp.ne.s32.totalorder %s92_s29, %s4256_s0  ;;  %p4261_p10 = scmp.lt.s32.totalorder %s92_s29, %s92_s29 }
  0x98   :  { %p4262_p11 = scmp.lt.s32.totalorder %s4260_s25, %s4256_s0 }
  0x9a   :  { %p4263_p12 = por %p4262_p11, %p4261_p10 }
  0x9c   :  { %p4264_p13 = pnand %p4263_p12, %p4257_p9 }
  0x9e   :  { %4267 = shalt.err (!%p4264_p13)
}
  0x9f   :  { %94 = dma.hbm_to_vmem [thread:$0]  %s5570_s8, 16, %s92_s29, [#allocation10]  }
  0xa0   :  { %s4268_s27 = scalar_lea.hbm %s5572_s10, 16 }
  0xa1   :  { %p4269_p0 = scmp.ne.s32.totalorder %s5572_s10, %s4268_s27  ;;  %p4272_p1 = scmp.lt.u32.totalorder %s4268_s27, %s5572_s10 }
  0xa3   :  { %p4274_p2 = pnand %p4272_p1, %p4269_p0 }
  0xa5   :  { %4277 = shalt.err (!%p4274_p2)
}
  0xa6   :  { %s4278_s3 = scalar_lea.vmem %s112_s5, 16  ;;  %s4282_s1 = scalar_lea.vmem %s112_s5, 32 }
  0xa7   :  { %p4279_p3 = scmp.ne.s32.totalorder %s112_s5, %s4278_s3  ;;  %p4283_p4 = scmp.lt.s32.totalorder %s112_s5, %s112_s5 }
  0xa8   :  { %p4284_p5 = scmp.lt.s32.totalorder %s4282_s1, %s4278_s3 }
  0xaa   :  { %p4285_p6 = por %p4284_p5, %p4283_p4 }
  0xac   :  { %p4286_p7 = pnand %p4285_p6, %p4279_p3 }
  0xae   :  { %4289 = shalt.err (!%p4286_p7)
}
  0xaf   :  { %114 = dma.hbm_to_vmem [thread:$0]  %s5572_s10, 16, %s112_s5, [#allocation13]  }
  0xb0   :  { %s4448_s26 = smov [#allocation17]   ;;  %s4290_s25 = scalar_lea.hbm %s5578_s16, 16 }
  0xb1   :  { %s141_s23 = sshll.u32 %s4448_s26, 4  ;;  %p4291_p8 = scmp.ne.s32.totalorder %s5578_s16, %s4290_s25  ;;  %s142_s23 = int_to_ptr.vmem [resolvable:$true] %s141_s23 }
  0xb2   :  { %p4294_p9 = scmp.lt.u32.totalorder %s4290_s25, %s5578_s16 }
  0xb4   :  { %p4296_p10 = pnand %p4294_p9, %p4291_p8 }
  0xb6   :  { %4299 = shalt.err (!%p4296_p10)
}
  0xb7   :  { %s4300_s27 = scalar_lea.vmem %s142_s23, 16  ;;  %s4304_s10 = scalar_lea.vmem %s142_s23, 32 }
  0xb8   :  { %p4301_p11 = scmp.ne.s32.totalorder %s142_s23, %s4300_s27  ;;  %p4305_p12 = scmp.lt.s32.totalorder %s142_s23, %s142_s23 }
  0xb9   :  { %p4306_p13 = scmp.lt.s32.totalorder %s4304_s10, %s4300_s27 }
  0xbb   :  { %p4307_p0 = por %p4306_p13, %p4305_p12 }
  0xbd   :  { %p4308_p1 = pnand %p4307_p0, %p4301_p11 }
  0xbf   :  { %4311 = shalt.err (!%p4308_p1)
}
  0xc0   :  { %144 = dma.hbm_to_vmem [thread:$0]  %s5578_s16, 16, %s142_s23, [#allocation16]  }
  0xc1   :  { %4422 = dma.done.wait [#allocation4], 128  }
  0xc2   :  { %4423 = vsyncadd [#allocation4], 4294967168 }
  0xc3   :  { %4424 = dma.done.wait [#allocation7], 32  }
  0xc4   :  { %4425 = vsyncadd [#allocation7], 4294967264 }
  0xc5   :  { %4426 = dma.done.wait [#allocation10], 32  }
  0xc6   :  { %4427 = vsyncadd [#allocation10], 4294967264 }
  0xc7   :  { %4428 = dma.done.wait [#allocation13], 32  }
  0xc8   :  { %4429 = vsyncadd [#allocation13], 4294967264 }
  0xc9   :  { %4430 = dma.done.wait [#allocation16], 6160  }
  0xca   :  { %4431 = vsyncadd [#allocation16], 4294961136  ;;  %v5597_v0 = vmov 0   ;;  %vm210_vm0 = vcmask 1040384   ;;  %v189_v1 = vld [vmem:[#allocation6] sm:$0x1] }
  0xcb   :  { %3982 = vset.pattern.permute.xlu1 %v5597_v0  ;;  %3981 = vset.pattern.permute.xlu0 %v5597_v0  ;;  %s5616_s16 = sld [smem:[#allocation34_spill]]  ;;  %vm197_vm1 = vcmask 15360   ;;  %v212_v4 = vsel %vm210_vm0, %v189_v1, 0  ;;  %v299_v8 = vld [vmem:[#allocation9] sm:$0x1]  ;;  %s5617_s5 = sld [smem:[#allocation36_spill]] }
  0xcc   :  { %3954 = vmatprep.subr.msk.bf16.mxu0 %vm210_vm0, %v189_v1  ;;  %v320_v12 = vsel %vm210_vm0, %v299_v8, 0  ;;  %s5618_s3 = sld [smem:[#allocation35_spill]]  ;;  %v3983_v37 = vld [vmem:[%s5574_s12 + $0x4] ss:$12 sps:$4 sm:$0x1f]   ;;  %vm523_vm2 = vcmask 1044480  }
  0xcd   :  { %3129 = vmatpush3.bf16.msra.mxu0 %v212_v4  ;;  %v3985_v38 = vld [vmem:[%s5574_s12] ss:$12 sps:$4 sm:$0x1f]   ;;  %v3986_v40 = vld [vmem:[%s5574_s12 + $0x8] ss:$12 sps:$4 sm:$0x1f]  }
  0xce   :  { %3955 = vmatprep.subr.msk.bf16.mxu0 %vm210_vm0, %v299_v8  ;;  %v525_v39 = vsel %vm523_vm2, %v3985_v38, 0  ;;  %3956 = vmatprep.subr.msk.bf16.mxu1 %vm523_vm2, %v3986_v40  ;;  %v531_v41 = vsel %vm523_vm2, %v3986_v40, 0  ;;  %v3987_v42 = vld [vmem:[%s5573_s11 + $0x4] ss:$12 sps:$4 sm:$0x1f]   ;;  %vm870_vm3 = vcmask 1041408  }
  0xcf   :  { %3149 = vmatpush3.bf16.msra.mxu1 %v531_v41  ;;  %v3990_v43 = vld [vmem:[%s5573_s11 + $0x8] ss:$12 sps:$4 sm:$0x1f]   ;;  %vm871_vm4 = vcmask 1042432   ;;  %vm510_vm5 = vcmask 80896   ;;  %vm857_vm6 = vcmask 39936  }
  0xd0   :  { %3957 = vmatprep.subr.msk.bf16.mxu1 %vm523_vm2, %v3990_v43  ;;  %v4805_v44 = vsel %vm523_vm2, %v3990_v43, 0  ;;  %v2887_v45 = vld [vmem:[#allocation8] ss:$0 sm:$0xff]  ;;  %vm4453_vm7 = vmmov 0   ;;  %s5626_s25 = sld [smem:[#allocation38_spill]]  ;;  %s4454_s9 = smov [#allocation18]  }
  0xd1   :  { %v177_v2 = vld [vmem:[%s5616_s16] sm:$0xff]  ;;  %v178_v3 = vld [vmem:[%s5616_s16 + $0x8] sm:$0xff]  ;;  %v179_v6 = vld [vmem:[%s5616_s16 + $0x10] sm:$0xff]  ;;  %s2804_s4 = sshll.u32 %s4454_s9, 4  ;;  %s2805_s4 = int_to_ptr.vmem [resolvable:$true] %s2804_s4 }
  0xd2   :  { %v185_v5 = vpack.c.bf16 %v178_v3, %v177_v2  ;;  %v180_v7 = vld [vmem:[%s5616_s16 + $0x18] sm:$0xff]  ;;  %v181_v10 = vld [vmem:[%s5616_s16 + $0x20] sm:$0xff]  ;;  %v182_v11 = vld [vmem:[%s5616_s16 + $0x28] sm:$0xff]  ;;  %s4312_s1 = scalar_lea.vmem %s2805_s4, 1024  ;;  %p4317_p3 = scmp.lt.s32.totalorder %s2805_s4, %s2805_s4 }
  0xd3   :  { %v186_v9 = vpack.c.bf16 %v180_v7, %v179_v6  ;;  %v187_v13 = vpack.c.bf16 %v182_v11, %v181_v10  ;;  %v183_v14 = vld [vmem:[%s5616_s16 + $0x30] sm:$0xff]  ;;  %v184_v15 = vld [vmem:[%s5616_s16 + $0x38] sm:$0xff]  ;;  %v395_v17 = vld [vmem:[%s5617_s5] sm:$0xff]  ;;  %p4313_p2 = scmp.ne.s32.totalorder %s2805_s4, %s4312_s1  ;;  %p4318_p4 = scmp.lt.s32.totalorder %s4312_s1, %s4312_s1 }
  0xd4   :  { %3130 = vmatprep.mubr.msk.bf16.mxu0 %vm197_vm1, %v185_v5  ;;  %v397_v16 = vld [vmem:[%s5617_s5 + $0x10] sm:$0xff]  ;;  %v287_v18 = vld [vmem:[%s5618_s3] sm:$0xff]  ;;  %v288_v19 = vld [vmem:[%s5618_s3 + $0x8] sm:$0xff]  ;;  %406 = vperm.xlu0 %3981, %v395_v17   ;;  %v188_v22 = vpack.c.bf16 %v184_v15, %v183_v14 }
  0xd5   :  { %3131 = vmatmul.mubr.msk.bf16.vlgmr.msra.gmra.mrb[0].mxu0 %vm197_vm1, %v186_v9  ;;  %416 = vperm.xlu1 %3982, %v397_v16   ;;  %v398_v20 = vld [vmem:[%s5617_s5 + $0x18] sm:$0xff]  ;;  %v396_v21 = vld [vmem:[%s5617_s5 + $0x8] sm:$0xff]  ;;  %v295_v23 = vpack.c.bf16 %v288_v19, %v287_v18  ;;  %v399_v25 = vld [vmem:[%s5617_s5 + $0x20] sm:$0xff]  ;;  %p4319_p5 = por %p4318_p4, %p4317_p3 }
  0xd6   :  { %3139 = vmatpush3.bf16.msra.mxu0 %v320_v12  ;;  %3134 = vmatprep.mubr.msk.bf16.mxu0 %vm197_vm1, %v187_v13  ;;  %v400_v24 = vld [vmem:[%s5617_s5 + $0x28] sm:$0xff]  ;;  %v289_v26 = vld [vmem:[%s5618_s3 + $0x10] sm:$0xff]  ;;  %v290_v27 = vld [vmem:[%s5618_s3 + $0x18] sm:$0xff] }
  0xd7   :  { %v291_v28 = vld [vmem:[%s5618_s3 + $0x20] sm:$0xff]  ;;  %v292_v29 = vld [vmem:[%s5618_s3 + $0x28] sm:$0xff]  ;;  %v402_v30 = vld [vmem:[%s5617_s5 + $0x38] sm:$0xff]  ;;  %v296_v32 = vpack.c.bf16 %v290_v27, %v289_v26  ;;  %2902 = vmatprep.subr.msk.bf16.mxu0 %vm523_vm2, %v3983_v37  ;;  %p4320_p6 = pnand %p4319_p5, %p4313_p2 }
  0xd8   :  { %411 = vperm.xlu0 %3981, %v396_v21   ;;  %v401_v31 = vld [vmem:[%s5617_s5 + $0x30] sm:$0xff]  ;;  %v297_v33 = vpack.c.bf16 %v292_v29, %v291_v28  ;;  %v294_v35 = vld [vmem:[%s5618_s3 + $0x38] sm:$0xff]  ;;  %v2892_v9 = vld [vmem:[#allocation11] ss:$0 sm:$0xff] }
  0xd9   :  { %421 = vperm.xlu1 %3982, %v398_v20   ;;  %v293_v34 = vld [vmem:[%s5618_s3 + $0x30] sm:$0xff]  ;;  %v4818_v17 = vld [vmem:[%s5575_s13] sm:$0x77]  ;;  %v4450_v20 = vmov 65535  }
  0xda   :  { %v298_v36 = vpack.c.bf16 %v294_v35, %v293_v34  ;;  %v872_v21 = vsel %vm870_vm3, 4294967295, %v4450_v20  ;;  %v3991_v26 = vld [vmem:[%s5575_s13 + $0x8] ss:$0 sps:$4 sm:$0x77]   ;;  %v2924_v27 = vcombine.high %v4818_v17, %v4818_v17 }
  0xdc   :  { %426 = vperm.xlu0 %3981, %v399_v25  }
  0xdd   :  { %3135 = vmatmul.mubr.msk.bf16.gmra.mrb[4].mxu0 %vm197_vm1, %v188_v22  ;;  %431 = vperm.xlu1 %3982, %v400_v24  }
  0xde   :  { %3140 = vmatprep.mubr.msk.bf16.mxu0 %vm197_vm1, %v295_v23  ;;  %v3989_v23 = vld [vmem:[%s5573_s11] ss:$12 sps:$4 sm:$0x1f]  }
  0xdf   :  { %v697_v34 = vsel %vm523_vm2, %v3989_v23, 0 }
  0xe0   :  { %436 = vperm.xlu0 %3981, %v401_v31  }
  0xe1   :  { %441 = vperm.xlu1 %3982, %v402_v30   ;;  %v4828_v30 = vsel %vm871_vm4, %v872_v21, 0 }
  0xe2   :  { %v881_v37 = vand.u32 %v3991_v26, %v4828_v30  ;;  %v878_v38 = vand.u32 %v2924_v27, %v4828_v30  ;;  %v1110_v27 = vld [vmem:[#allocation15] sm:$0xff] }
  0xe5   :  { %3141 = vmatmul.mubr.msk.bf16.vlgmr.msra.gmra.mrb[8].mxu0 %vm197_vm1, %v296_v32 }
  0xe6   :  { %3144 = vmatprep.mubr.msk.bf16.mxu0 %vm197_vm1, %v297_v33  ;;  %534 = vmatpush1.bf16.msra.mxu0 %v525_v39 }
  0xe7   :  { %2914 = vmatprep.subr.msk.bf16.mxu0 %vm523_vm2, %v3987_v42 }
  0xed   :  { %3145 = vmatmul.mubr.msk.bf16.gmra.mrb[12].mxu0 %vm197_vm1, %v298_v36 }
  0xee   :  { %565 = vmatprep.mubr.bf16.mxu0 %v5597_v0 }
 0x1a8   :  { %v3132_v46 = vpop.f32.mrb[0].mxu0 }
 0x1a9   :  { %v257_v47 = vadd.f32 %v3132_v46, %v2887_v45  ;;  %v248_v48 = vpop.f32.mrb[1].mxu0 }
 0x1aa   :  { %v249_v49 = vadd.f32 %v2887_v45, %v248_v48  ;;  %v3133_v50 = vpop.f32.mrb[2].mxu0  ;;  %v407_v48 = vpop.permute.xlu0 %406 }
 0x1ab   :  { %v260_v51 = vadd.f32 %v3133_v50, %v2887_v45  ;;  %v251_v52 = vpop.f32.mrb[3].mxu0  ;;  %v281_v54 = vmax.f32 %v257_v47, 0.0 }
 0x1ac   :  { %v252_v53 = vadd.f32 %v2887_v45, %v251_v52  ;;  %v279_v56 = vmax.f32 %v249_v49, 0.0 }
 0x1ad   :  { %v282_v55 = vmax.f32 %v260_v51, 0.0  ;;  %v417_v51 = vpop.permute.xlu1 %416 }
 0x1ae   :  { %v280_v57 = vmax.f32 %v252_v53, 0.0  ;;  %v2897_v53 = vld [vmem:[#allocation12] ss:$0 sm:$0xff] }
 0x1af   :  { %v4807_v58 = vpack.c.bf16 %v282_v55, %v281_v54  ;;  %v412_v54 = vpop.permute.xlu0 %411 }
 0x1b0   :  { %v4809_v59 = vpack.c.bf16 %v280_v57, %v279_v56  ;;  %v3136_v60 = vpop.f32.mrb[4].mxu0  ;;  %v451_v55 = vmul.f32 %v2897_v53, %v412_v54  ;;  %v2898_v56 = vld [vmem:[#allocation14] ss:$0 sm:$0xff]  ;;  %v1131_v54 = vld [vmem:[#allocation15 + $0xa8] sm:$0xff] }
 0x1b1   :  { %v273_v61 = vadd.f32 %v3136_v60, %v2887_v45  ;;  %v264_v62 = vpop.f32.mrb[5].mxu0  ;;  %v422_v57 = vpop.permute.xlu1 %421  ;;  %v1111_v60 = vld [vmem:[#allocation15 + $0x8] sm:$0xff] }
 0x1b2   :  { %v265_v63 = vadd.f32 %v2887_v45, %v264_v62  ;;  %v3137_v1 = vpop.f32.mrb[6].mxu0 }
 0x1b3   :  { %v276_v2 = vadd.f32 %v3137_v1, %v2887_v45  ;;  %v267_v3 = vpop.f32.mrb[7].mxu0  ;;  %v285_v5 = vmax.f32 %v273_v61, 0.0  ;;  %v1114_v61 = vld [vmem:[#allocation15 + $0x20] sm:$0xff] }
 0x1b4   :  { %v268_v4 = vadd.f32 %v2887_v45, %v267_v3  ;;  %v283_v7 = vmax.f32 %v265_v63, 0.0  ;;  %v466_v63 = vadd.f32 %v2898_v56, %v451_v55  ;;  %v4844_v1 = vpack.c.bf16 %v1114_v61, %v1111_v60  ;;  %v1138_v55 = vld [vmem:[#allocation15 + $0xe0] sm:$0xff] }
 0x1b5   :  { %v286_v6 = vmax.f32 %v276_v2, 0.0  ;;  %v452_v2 = vmul.f32 %v2897_v53, %v417_v51  ;;  %v453_v3 = vmul.f32 %v2897_v53, %v422_v57  ;;  %v5599_v57 = vmov 0.0   ;;  %v1134_v61 = vld [vmem:[#allocation15 + $0xc0] sm:$0xff] }
 0x1b6   :  { %v284_v8 = vmax.f32 %v268_v4, 0.0  ;;  %v432_v4 = vpop.permute.xlu1 %431 }
 0x1b7   :  { %v4811_v10 = vpack.c.bf16 %v286_v6, %v285_v5  ;;  %v427_v5 = vpop.permute.xlu0 %426 }
 0x1b8   :  { %v4813_v11 = vpack.c.bf16 %v284_v8, %v283_v7  ;;  %v3142_v12 = vpop.f32.mrb[8].mxu0  ;;  %v474_v7 = vmax.f32 %v466_v63, 0.0  ;;  %v455_v8 = vmul.f32 %v2897_v53, %v432_v4  ;;  %v1144_v63 = vld [vmem:[#allocation15 + $0x110] sm:$0xff] }
 0x1b9   :  { %v365_v13 = vadd.f32 %v3142_v12, %v2892_v9  ;;  %v356_v14 = vpop.f32.mrb[9].mxu0  ;;  %v467_v12 = vadd.f32 %v2898_v56, %v452_v2  ;;  %v1140_v4 = vld [vmem:[#allocation15 + $0xf0] sm:$0xff] }
 0x1ba   :  { %v357_v15 = vadd.f32 %v2892_v9, %v356_v14  ;;  %v3143_v16 = vpop.f32.mrb[10].mxu0 }
 0x1bb   :  { %v368_v18 = vadd.f32 %v3143_v16, %v2892_v9  ;;  %v359_v19 = vpop.f32.mrb[11].mxu0  ;;  %v389_v24 = vmax.f32 %v365_v13, 0.0  ;;  %v468_v13 = vadd.f32 %v2898_v56, %v453_v3  ;;  %v475_v20 = vmax.f32 %v467_v12, 0.0  ;;  %v1146_v12 = vld [vmem:[#allocation15 + $0x120] sm:$0xff] }
 0x1bc   :  { %v360_v22 = vadd.f32 %v2892_v9, %v359_v19  ;;  %v387_v28 = vmax.f32 %v357_v15, 0.0  ;;  %v470_v15 = vadd.f32 %v2898_v56, %v455_v8  ;;  %v437_v19 = vpop.permute.xlu0 %436 }
 0x1bd   :  { %v390_v25 = vmax.f32 %v368_v18, 0.0  ;;  %v442_v18 = vpop.permute.xlu1 %441  ;;  %v476_v21 = vmax.f32 %v468_v13, 0.0  ;;  %v456_v26 = vmul.f32 %v2897_v53, %v437_v19  ;;  %v1149_v13 = vld [vmem:[#allocation15 + $0x138] sm:$0xff]  ;;  %v1152_v19 = vld [vmem:[#allocation15 + $0x150] sm:$0xff] }
 0x1be   :  { %v388_v29 = vmax.f32 %v360_v22, 0.0  ;;  %v2923_v22 = vcombine.low %v4818_v17, %v4818_v17  ;;  %v478_v23 = vmax.f32 %v470_v15, 0.0  ;;  %v1153_v15 = vld [vmem:[#allocation15 + $0x158] sm:$0xff] }
 0x1bf   :  { %v490_v31 = vpack.c.bf16 %v390_v25, %v389_v24  ;;  %v457_v25 = vmul.f32 %v2897_v53, %v442_v18  ;;  %v4922_v18 = vpack.c.bf16 %v1149_v13, %v1146_v12 }
 0x1c0   :  { %v489_v32 = vpack.c.bf16 %v388_v29, %v387_v28  ;;  %v3146_v33 = vpop.f32.mrb[12].mxu0  ;;  %v1113_v28 = vld [vmem:[#allocation15 + $0x18] sm:$0xff] }
 0x1c1   :  { %v381_v35 = vadd.f32 %v3146_v33, %v2892_v9  ;;  %v372_v36 = vpop.f32.mrb[13].mxu0  ;;  %v1117_v29 = vld [vmem:[#allocation15 + $0x38] sm:$0xff]  ;;  %v875_v33 = vand.u32 %v2923_v22, %v4828_v30  ;;  %v472_v17 = vadd.f32 %v2898_v56, %v457_v25  ;;  %v1112_v22 = vld [vmem:[#allocation15 + $0x10] sm:$0xff] }
 0x1c2   :  { %v373_v39 = vadd.f32 %v2892_v9, %v372_v36  ;;  %v3147_v40 = vpop.f32.mrb[14].mxu0  ;;  %2903 = vmatmul.mubr.msk.bf16.vlgmr.msra.gmra.mrb[16].mxu0 %vm510_vm5, %v489_v32  ;;  %3150 = vmatprep.mubr.msk.bf16.mxu1 %vm510_vm5, %v489_v32  ;;  %v4863_v32 = vpack.c.bf16 %v476_v21, %v475_v20  ;;  %v471_v36 = vadd.f32 %v2898_v56, %v456_v26  ;;  %v1155_v20 = vld [vmem:[#allocation15 + $0x168] sm:$0xff]  ;;  %v1118_v26 = vld [vmem:[#allocation15 + $0x40] sm:$0xff] }
 0x1c3   :  { %v393_v41 = vmax.f32 %v381_v35, 0.0  ;;  %v384_v42 = vadd.f32 %v3147_v40, %v2892_v9  ;;  %v375_v43 = vpop.f32.mrb[15].mxu0  ;;  %3151 = vmatmul.mubr.msk.bf16.vlgmr.msra.gmra.mrb[0].mxu1 %vm510_vm5, %v490_v31  ;;  %706 = vmatpush1.bf16.msra.mxu0 %v697_v34  ;;  %v4868_v35 = vpack.c.bf16 %v1113_v28, %v1110_v27  ;;  %v1123_v40 = vld [vmem:[#allocation15 + $0x68] sm:$0xff]  ;;  %v4931_v21 = vpack.c.bf16 %v1155_v20, %v1152_v19  ;;  %v1121_v27 = vld [vmem:[#allocation15 + $0x58] sm:$0xff]  ;;  %v1124_v28 = vld [vmem:[#allocation15 + $0x70] sm:$0xff] }
 0x1c4   :  { %v391_v45 = vmax.f32 %v373_v39, 0.0  ;;  %v376_v46 = vadd.f32 %v2892_v9, %v375_v43  ;;  %575 = vmatprep.mubr.bf16.mxu0 %v5597_v0  ;;  %3159 = vmatpush3.bf16.msra.mxu1 %v4805_v44  ;;  %v450_v44 = vmul.f32 %v2897_v53, %v407_v48  ;;  %v454_v9 = vmul.f32 %v2897_v53, %v427_v5  ;;  %v1119_v39 = vld [vmem:[#allocation15 + $0x48] sm:$0xff]  ;;  %v1132_v48 = vld [vmem:[#allocation15 + $0xb0] sm:$0xff] }
 0x1c5   :  { %v394_v47 = vmax.f32 %v384_v42, 0.0  ;;  %3168 = vmatprep.subr.bf16.mxu1 %v881_v37  ;;  %883 = vmatprep.subr.bf16.mxu0 %v878_v38  ;;  %v1116_v38 = vld [vmem:[#allocation15 + $0x30] sm:$0xff]  ;;  %v480_v42 = vmax.f32 %v472_v17, 0.0  ;;  %v479_v43 = vmax.f32 %v471_v36, 0.0  ;;  %v1143_v5 = vld [vmem:[#allocation15 + $0x108] sm:$0xff] }
 0x1c6   :  { %v392_v49 = vmax.f32 %v376_v46, 0.0  ;;  %v465_v62 = vadd.f32 %v2898_v56, %v450_v44  ;;  %v469_v16 = vadd.f32 %v2898_v56, %v454_v9  ;;  %v4879_v30 = vpack.c.bf16 %v1119_v39, %v1116_v38  ;;  %v1125_v46 = vld [vmem:[#allocation15 + $0x78] sm:$0xff]  ;;  %v1128_v53 = vld [vmem:[#allocation15 + $0x90] sm:$0xff]  ;;  %v1135_v44 = vld [vmem:[#allocation15 + $0xc8] sm:$0xff] }
 0x1c7   :  { %v492_v50 = vpack.c.bf16 %v394_v47, %v393_v41  ;;  %v1126_v41 = vld [vmem:[#allocation15 + $0x80] sm:$0xff]  ;;  %v1129_v47 = vld [vmem:[#allocation15 + $0x98] sm:$0xff]  ;;  %v4889_v51 = vpack.c.bf16 %v480_v42, %v479_v43  ;;  %v4900_v56 = vpack.c.bf16 %v1131_v54, %v1128_v53  ;;  %v4904_v60 = vpack.c.bf16 %v1138_v55, %v1135_v44  ;;  %v4937_v25 = vld [vmem:[#allocation3] sm:$0xff] }
 0x1c8   :  { %v491_v52 = vpack.c.bf16 %v392_v49, %v391_v45  ;;  %v473_v6 = vmax.f32 %v465_v62, 0.0  ;;  %v477_v24 = vmax.f32 %v469_v16, 0.0  ;;  %v1122_v45 = vld [vmem:[#allocation15 + $0x60] sm:$0xff]  ;;  %v5601_v49 = vmov 0.0|0.0   ;;  %v1141_v62 = vld [vmem:[#allocation15 + $0xf8] sm:$0xff]  ;;  %v1156_v16 = vld [vmem:[#allocation15 + $0x170] sm:$0xff] }
 0x1c9   :  { %v4910_v3 = vpack.c.bf16 %v1144_v63, %v1141_v62  ;;  %v4916_v8 = vpack.c.bf16 %v1143_v5, %v1140_v4  ;;  %v1136_v36 = vld [vmem:[#allocation15 + $0xd0] sm:$0xff]  ;;  %v1139_v38 = vld [vmem:[#allocation15 + $0xe8] sm:$0xff] }
 0x1ca   :  { %2904 = vmatmul.mubr.msk.bf16.gmra.mrb[20].mxu0 %vm510_vm5, %v490_v31  ;;  %3154 = vmatprep.mubr.msk.bf16.mxu1 %vm510_vm5, %v491_v52  ;;  %v4853_v14 = vpack.c.bf16 %v474_v7, %v473_v6  ;;  %v1120_v31 = vld [vmem:[#allocation15 + $0x50] sm:$0xff]  ;;  %v4866_v34 = vpack.c.bf16 %v478_v23, %v477_v24  ;;  %v1147_v6 = vld [vmem:[#allocation15 + $0x128] sm:$0xff]  ;;  %v1150_v7 = vld [vmem:[#allocation15 + $0x140] sm:$0xff]  ;;  %v4967_v39 = vpack.c.bf16 %v1139_v38, %v1136_v36 }
 0x1cb   :  { %3155 = vmatmul.mubr.msk.bf16.gmra.mrb[4].mxu1 %vm510_vm5, %v492_v50  ;;  %585 = vmatprep.mubr.bf16.mxu0 %v5597_v0  ;;  %v4919_v9 = vpack.c.bf16 %v1150_v7, %v1147_v6  ;;  %v1115_v23 = vld [vmem:[#allocation15 + $0x28] sm:$0xff]  ;;  %v1148_v42 = vld [vmem:[#allocation15 + $0x130] sm:$0xff] }
 0x1cc   :  { %3160 = vmatprep.mubr.msk.bf16.mxu1 %vm510_vm5, %v4809_v59  ;;  %v4934_v24 = vpack.c.bf16 %v1115_v23, %v1112_v22  ;;  %v1151_v43 = vld [vmem:[#allocation15 + $0x148] sm:$0xff] }
 0x1cd   :  { %v1045_v54 = vld [vmem:[%s5576_s14] sm:$0x7] }
 0x1d2   :  { %2905 = vmatmul.mubr.msk.bf16.gmra.mrb[24].mxu0 %vm510_vm5, %v491_v52  ;;  %v4892_v52 = vpack.c.bf16 %v1132_v48, %v1129_v47  ;;  %v1047_v48 = vlaneseq }
 0x1d3   :  { %3161 = vmatmul.mubr.msk.bf16.vlgmr.msra.gmra.mrb[0].mxu1 %vm510_vm5, %v4807_v58  ;;  %595 = vmatprep.mubr.bf16.mxu0 %v5597_v0 }
 0x1d4   :  { %3164 = vmatprep.mubr.msk.bf16.mxu1 %vm510_vm5, %v4813_v11  ;;  %3169 = vmatpush3.bf16.msra.mxu1 %v881_v37  ;;  %v4870_v37 = vpack.c.bf16 %v1120_v31, %v1117_v29  ;;  %v1127_v29 = vld [vmem:[#allocation15 + $0x88] sm:$0xff]  ;;  %v1130_v31 = vld [vmem:[#allocation15 + $0xa0] sm:$0xff] }
 0x1d5   :  { %3459 = vmatprep.subr.bf16.mxu1 %v4844_v1 }
 0x1da   :  { %2906 = vmatmul.mubr.msk.bf16.gmra.mrb[28].mxu0 %vm510_vm5, %v492_v50  ;;  %v4887_v50 = vpack.c.bf16 %v1125_v46, %v1122_v45  ;;  %v4982_v45 = vpack.c.bf16 %v1151_v43, %v1148_v42  ;;  %v1157_v46 = vld [vmem:[#allocation15 + $0x178] sm:$0xff] }
 0x1db   :  { %3165 = vmatmul.mubr.msk.bf16.gmra.mrb[4].mxu1 %vm510_vm5, %v4811_v10  ;;  %737 = vmatprep.mubr.bf16.mxu0 %v5597_v0 }
 0x1dc   :  { %3170 = vmatprep.mubr.msk.bf16.mxu1 %vm857_vm6, %v4853_v14 }
 0x1e2   :  { %2915 = vmatmul.mubr.msk.bf16.vlgmr.msra.gmra.mrb[16].mxu0 %vm510_vm5, %v4809_v59  ;;  %v4883_v59 = vpack.c.bf16 %v1126_v41, %v1123_v40  ;;  %v1145_v40 = vld [vmem:[#allocation15 + $0x118] sm:$0xff] }
 0x1e3   :  { %884 = vmatpush1.bf16.msra.mxu0 %v875_v33  ;;  %3171 = vmatmul.mubr.msk.bf16.vlgmr.msra.gmra.mrb[0].mxu1 %vm857_vm6, %v4863_v32  ;;  %v1133_v33 = vld [vmem:[#allocation15 + $0xb8] sm:$0xff] }
 0x1e4   :  { %3174 = vmatprep.mubr.msk.bf16.mxu1 %vm857_vm6, %v4866_v34  ;;  %3461 = vmatpush1.bf16.msra.mxu1 %v4868_v35  ;;  %v4960_v17 = vpack.c.bf16 %v1133_v33, %v1130_v31 }
 0x1e5   :  { %3463 = vmatprep.subr.bf16.mxu1 %v4870_v37  ;;  %747 = vmatprep.mubr.bf16.mxu0 %v5597_v0 }
 0x1e6   :  { %3490 = vmatprep.subr.bf16.mxu0 %v5601_v49 }
 0x1e8   :  { %3465 = vmatpush1.bf16.msra.mxu1 %v4879_v30 }
 0x1e9   :  { %3467 = vmatprep.subr.bf16.mxu1 %v4883_v59 }
 0x1ea   :  { %2916 = vmatmul.mubr.msk.bf16.gmra.mrb[20].mxu0 %vm510_vm5, %v4807_v58  ;;  %v1137_v58 = vld [vmem:[#allocation15 + $0xd8] sm:$0xff] }
 0x1eb   :  { %3175 = vmatmul.mubr.msk.bf16.gmra.mrb[4].mxu1 %vm857_vm6, %v4889_v51  ;;  %757 = vmatprep.mubr.bf16.mxu0 %v5597_v0  ;;  %v4907_v2 = vpack.c.bf16 %v1137_v58, %v1134_v61 }
 0x1ec   :  { %3469 = vmatpush1.bf16.msra.mxu1 %v4887_v50  ;;  %1236 = vmatprep.mubr.f32.mxu1 %v5599_v57 }
 0x1ed   :  { %3471 = vmatprep.subr.bf16.mxu1 %v4892_v52 }
 0x1f0   :  { %3473 = vmatpush1.bf16.msra.mxu1 %v4900_v56 }
 0x1f1   :  { %3475 = vmatprep.subr.bf16.mxu1 %v4904_v60 }
 0x1f2   :  { %2917 = vmatmul.mubr.msk.bf16.gmra.mrb[24].mxu0 %vm510_vm5, %v4813_v11  ;;  %v4925_v11 = vpack.c.bf16 %v1156_v16, %v1153_v15 }
 0x1f3   :  { %767 = vmatprep.mubr.bf16.mxu0 %v5597_v0 }
 0x1f4   :  { %3477 = vmatpush1.bf16.msra.mxu1 %v4907_v2 }
 0x1f5   :  { %3479 = vmatprep.subr.bf16.mxu1 %v4910_v3 }
 0x1f8   :  { %3481 = vmatpush1.bf16.msra.mxu1 %v4916_v8 }
 0x1f9   :  { %3483 = vmatprep.subr.bf16.mxu1 %v4919_v9 }
 0x1fa   :  { %2918 = vmatmul.mubr.msk.bf16.gmra.mrb[28].mxu0 %vm510_vm5, %v4811_v10  ;;  %v4944_v10 = vpack.c.bf16 %v1121_v27, %v1118_v26 }
 0x1fb   :  { %915 = vmatprep.mubr.bf16.mxu0 %v5597_v0 }
 0x1fc   :  { %3485 = vmatpush1.bf16.msra.mxu1 %v4922_v18 }
 0x1fd   :  { %3487 = vmatprep.subr.bf16.mxu1 %v4925_v11 }
 0x200   :  { %3489 = vmatpush1.bf16.msra.mxu1 %v4931_v21 }
 0x201   :  { %3515 = vmatprep.subr.bf16.mxu1 %v4844_v1 }
 0x202   :  { %2926 = vmatmul.mubr.msk.bf16.vlgmr.msra.gmra.mrb[16].mxu0 %vm857_vm6, %v4853_v14  ;;  %v4952_v14 = vpack.c.bf16 %v1127_v29, %v1124_v28 }
 0x203   :  { %3492 = vmatpush3.bf16.msra.mxu0 %v4934_v24  ;;  %1237 = vmatmul.mubr.f32.vlgmr.msra.gmra.mrb[8].mxu1 %v4937_v25 }
 0x204   :  { %3493 = vmatprep.subr.bf16.mxu0 %v5601_v49  ;;  %925 = vmatprep.mubr.bf16.mxu0 %v5597_v0 }
 0x205   :  { %3517 = vmatpush1.bf16.msra.mxu1 %v4868_v35  ;;  %1406 = vmatprep.mubr.f32.mxu1 %v5599_v57 }
 0x206   :  { %3519 = vmatprep.subr.bf16.mxu1 %v4870_v37 }
 0x207   :  { %3495 = vmatpush3.bf16.msra.mxu0 %v4944_v10 }
 0x208   :  { %3496 = vmatprep.subr.bf16.mxu0 %v5601_v49 }
 0x209   :  { %3521 = vmatpush1.bf16.msra.mxu1 %v4879_v30 }
 0x20a   :  { %2927 = vmatmul.mubr.msk.bf16.gmra.mrb[20].mxu0 %vm857_vm6, %v4863_v32  ;;  %3523 = vmatprep.subr.bf16.mxu1 %v4883_v59  ;;  %v1142_v32 = vld [vmem:[#allocation15 + $0x100] sm:$0xff] }
 0x20b   :  { %3498 = vmatpush3.bf16.msra.mxu0 %v4952_v14  ;;  %935 = vmatprep.mubr.bf16.mxu0 %v5597_v0  ;;  %v4975_v41 = vpack.c.bf16 %v1145_v40, %v1142_v32 }
 0x20c   :  { %3499 = vmatprep.subr.bf16.mxu0 %v5601_v49 }
 0x20d   :  { %3525 = vmatpush1.bf16.msra.mxu1 %v4887_v50 }
 0x20e   :  { %3527 = vmatprep.subr.bf16.mxu1 %v4892_v52 }
 0x20f   :  { %3501 = vmatpush3.bf16.msra.mxu0 %v4960_v17 }
 0x210   :  { %3502 = vmatprep.subr.bf16.mxu0 %v5601_v49 }
 0x211   :  { %3529 = vmatpush1.bf16.msra.mxu1 %v4900_v56 }
 0x212   :  { %2928 = vmatmul.mubr.msk.bf16.gmra.mrb[24].mxu0 %vm857_vm6, %v4866_v34  ;;  %3531 = vmatprep.subr.bf16.mxu1 %v4904_v60  ;;  %v1154_v34 = vld [vmem:[#allocation15 + $0x160] sm:$0xff] }
 0x213   :  { %3504 = vmatpush3.bf16.msra.mxu0 %v4967_v39  ;;  %945 = vmatprep.mubr.bf16.mxu0 %v5597_v0  ;;  %v4990_v47 = vpack.c.bf16 %v1157_v46, %v1154_v34 }
 0x214   :  { %3505 = vmatprep.subr.bf16.mxu0 %v5601_v49 }
 0x215   :  { %3533 = vmatpush1.bf16.msra.mxu1 %v4907_v2 }
 0x216   :  { %3535 = vmatprep.subr.bf16.mxu1 %v4910_v3 }
 0x217   :  { %3507 = vmatpush3.bf16.msra.mxu0 %v4975_v41 }
 0x218   :  { %3508 = vmatprep.subr.bf16.mxu0 %v5601_v49 }
 0x219   :  { %3537 = vmatpush1.bf16.msra.mxu1 %v4916_v8 }
 0x21a   :  { %2929 = vmatmul.mubr.msk.bf16.gmra.mrb[28].mxu0 %vm857_vm6, %v4889_v51  ;;  %3539 = vmatprep.subr.bf16.mxu1 %v4919_v9  ;;  %v5020_v51 = vshrl.u32 %v1047_v48, 7 }
 0x21b   :  { %3510 = vmatpush3.bf16.msra.mxu0 %v4982_v45  ;;  %3210 = vmatprep.mubr.msk.f32.mxu0 %vm4453_vm7, %v5599_v57 }
 0x21c   :  { %3511 = vmatprep.subr.bf16.mxu0 %v5601_v49  ;;  %v1057_v53 = vsub.s32 2, %v5020_v51  ;;  %v5596_v22 = vsub.s32 0, %v5020_v51  ;;  %v5595_v23 = vsub.s32 1, %v5020_v51 }
 0x21d   :  { %3541 = vmatpush1.bf16.msra.mxu1 %v4922_v18 }
 0x21e   :  { %3543 = vmatprep.subr.bf16.mxu1 %v4925_v11  ;;  %v5026_v44 = vrot.slane %v1045_v54, %v1057_v53  ;;  %v1050_v26 = vrot.slane %v1045_v54, %v5596_v22  ;;  %v1054_v27 = vrot.slane %v1045_v54, %v5595_v23 }
 0x21f   :  { %3513 = vmatpush3.bf16.msra.mxu0 %v4990_v47 }
 0x220   :  { %3546 = vmatprep.subr.bf16.mxu0 %v5601_v49 }
 0x221   :  { %3545 = vmatpush1.bf16.msra.mxu1 %v4931_v21 }
 0x222   :  { %3211 = vmatmul.mubr.f32.vlgmr.msra.gmra.mrb[32].mxu0 %v4937_v25  ;;  %3571 = vmatprep.subr.bf16.mxu1 %v4844_v1 }
 0x223   :  { %3548 = vmatpush3.bf16.msra.mxu0 %v4934_v24  ;;  %3245 = vmatprep.mubr.msk.f32.mxu0 %vm4453_vm7, %v5599_v57 }
 0x224   :  { %3549 = vmatprep.subr.bf16.mxu0 %v5601_v49 }
 0x227   :  { %3551 = vmatpush3.bf16.msra.mxu0 %v4944_v10 }
 0x228   :  { %3552 = vmatprep.subr.bf16.mxu0 %v5601_v49 }
 0x22b   :  { %3554 = vmatpush3.bf16.msra.mxu0 %v4952_v14 }
 0x22c   :  { %3555 = vmatprep.subr.bf16.mxu0 %v5601_v49 }
 0x22f   :  { %3557 = vmatpush3.bf16.msra.mxu0 %v4960_v17 }
 0x230   :  { %3558 = vmatprep.subr.bf16.mxu0 %v5601_v49 }
 0x233   :  { %3560 = vmatpush3.bf16.msra.mxu0 %v4967_v39 }
 0x234   :  { %3561 = vmatprep.subr.bf16.mxu0 %v5601_v49 }
 0x237   :  { %3563 = vmatpush3.bf16.msra.mxu0 %v4975_v41 }
 0x238   :  { %3564 = vmatprep.subr.bf16.mxu0 %v5601_v49 }
 0x23b   :  { %3566 = vmatpush3.bf16.msra.mxu0 %v4982_v45 }
 0x23c   :  { %3567 = vmatprep.subr.bf16.mxu0 %v5601_v49 }
 0x23f   :  { %3569 = vmatpush3.bf16.msra.mxu0 %v4990_v47 }
 0x240   :  { %3602 = vmatprep.subr.bf16.mxu0 %v5601_v49 }
 0x2b6   :  { %v3172_v55 = vpop.f32.mrb[0].mxu1 }
 0x2b7   :  { %v5029_v61 = vadd.f32 %v3172_v55, %v5026_v44  ;;  %v5031_v58 = vpop.f32.mrb[1].mxu1 }
 0x2b8   :  { %v3173_v62 = vpop.f32.mrb[2].mxu1 }
 0x2b9   :  { %v5034_v63 = vadd.f32 %v3173_v62, %v5026_v44  ;;  %v993_v4 = vpop.f32.mrb[3].mxu1 }
 0x2ba   :  { %v5037_v5 = vadd.f32 %v5026_v44, %v993_v4 }
 0x2be   :  { %v3176_v6 = vpop.f32.mrb[4].mxu1 }
 0x2bf   :  { %v5040_v7 = vadd.f32 %v3176_v6, %v5026_v44  ;;  %v1006_v12 = vpop.f32.mrb[5].mxu1 }
 0x2c0   :  { %v5043_v13 = vadd.f32 %v5026_v44, %v1006_v12  ;;  %v3177_v15 = vpop.f32.mrb[6].mxu1 }
 0x2c1   :  { %v5046_v16 = vadd.f32 %v3177_v15, %v5026_v44  ;;  %v1009_v19 = vpop.f32.mrb[7].mxu1 }
 0x2c2   :  { %v5049_v20 = vadd.f32 %v5026_v44, %v1009_v19 }
 0x2c3   :  { %5619 = vst [vmem:[#allocation33_spill] sm:$0xff] %v5046_v16 }
 0x2d5   :  { %v917_v28 = vpop.f32.mrb[16].mxu0 }
 0x2d6   :  { %v1062_v29 = vadd.f32 %v1050_v26, %v917_v28  ;;  %v919_v31 = vpop.f32.mrb[17].mxu0  ;;  %v1238_v33 = vpop.f32.mrb[8].mxu1 }
 0x2d7   :  { %v1063_v36 = vadd.f32 %v1054_v27, %v919_v31  ;;  %v921_v38 = vpop.f32.mrb[18].mxu0  ;;  %v1240_v32 = vpop.f32.mrb[9].mxu1 }
 0x2d8   :  { %v5057_v40 = vadd.f32 %v1050_v26, %v921_v38  ;;  %v1313_v42 = vadd.f32 %v1238_v33, %v1062_v29  ;;  %v923_v43 = vpop.f32.mrb[19].mxu0 }
 0x2d9   :  { %v5059_v34 = vadd.f32 %v1054_v27, %v923_v43  ;;  %v1320_v46 = vadd.f32 %v1240_v32, %v1063_v36 }
 0x2da   :  { %v2935_v48 = vmul.f32 -1.442695, %v1313_v42 }
 0x2db   :  { %v2936_v19 = vmul.f32 -1.442695, %v1320_v46 }
 0x2dc   :  { %4018 = vpow2.f32 %v2935_v48 }
 0x2dd   :  { %v927_v53 = vpop.f32.mrb[20].mxu0  ;;  %4020 = vpow2.f32 %v2936_v19 }
 0x2de   :  { %v5061_v55 = vadd.f32 %v1050_v26, %v927_v53  ;;  %v929_v54 = vpop.f32.mrb[21].mxu0 }
 0x2df   :  { %v5063_v62 = vadd.f32 %v1054_v27, %v929_v54  ;;  %v931_v4 = vpop.f32.mrb[22].mxu0 }
 0x2e0   :  { %v5065_v6 = vadd.f32 %v1050_v26, %v931_v4  ;;  %v933_v12 = vpop.f32.mrb[23].mxu0 }
 0x2e1   :  { %v5067_v15 = vadd.f32 %v1054_v27, %v933_v12 }
 0x2e5   :  { %v937_v28 = vpop.f32.mrb[24].mxu0 }
 0x2e6   :  { %v4019_v29 = vpop.eup %4018  ;;  %v5069_v31 = vadd.f32 %v1050_v26, %v937_v28  ;;  %v939_v33 = vpop.f32.mrb[25].mxu0 }
 0x2e7   :  { %v5071_v36 = vadd.f32 %v1054_v27, %v939_v33  ;;  %v941_v38 = vpop.f32.mrb[26].mxu0  ;;  %v1317_v43 = vadd.f32 1.0, %v4019_v29  ;;  %v4021_v33 = vpop.eup %4020 }
 0x2e8   :  { %v5073_v32 = vadd.f32 %v1050_v26, %v941_v38  ;;  %v943_v42 = vpop.f32.mrb[27].mxu0  ;;  %v5085_v38 = vld [vmem:[#allocation17] ss:$0 sm:$0xff]  ;;  %v1324_v22 = vadd.f32 1.0, %v4021_v33 }
 0x2e9   :  { %v5075_v48 = vadd.f32 %v1054_v27, %v943_v42  ;;  %4022 = vrcp.f32 %v1317_v43 }
 0x2ea   :  { %4024 = vrcp.f32 %v1324_v22 }
 0x2ed   :  { %v947_v53 = vpop.f32.mrb[28].mxu0 }
 0x2ee   :  { %v5077_v54 = vadd.f32 %v1050_v26, %v947_v53  ;;  %v949_v46 = vpop.f32.mrb[29].mxu0  ;;  %v1064_v53 = vadd.f32 %v5026_v44, %v5031_v58 }
 0x2ef   :  { %v5079_v4 = vadd.f32 %v1054_v27, %v949_v46  ;;  %v951_v12 = vpop.f32.mrb[30].mxu0 }
 0x2f0   :  { %v5081_v28 = vadd.f32 %v1050_v26, %v951_v12  ;;  %v953_v19 = vpop.f32.mrb[31].mxu0 }
 0x2f1   :  { %v5083_v23 = vadd.f32 %v1054_v27, %v953_v19 }
 0x2f3   :  { %v4023_v0 = vpop.eup %4022 }
 0x2f4   :  { %v4025_v26 = vpop.eup %4024 }
 0x2f5   :  { %v1309_v29 = vpop.f32.mrb[32].mxu0  ;;  %v1331_v12 = vsub.f32 1.0, %v4025_v26  ;;  %v1333_v19 = vmul.f32 %v4025_v26, %v4937_v25 }
 0x2f6   :  { %v1327_v42 = vadd.f32 %v5085_v38, %v1309_v29  ;;  %v3212_v43 = vpop.f32.mrb[33].mxu0 }
 0x2f8   :  { %v1328_v46 = vmul.f32 %v4023_v0, %v1327_v42  ;;  %v5620_v0 = vmov 0.0|0.0  }
 0x2fa   :  { %v1329_v57 = vadd.f32 %v1328_v46, %v1064_v53 }
 0x2fc   :  { %4026 = vtanh.f32 %v1329_v57  ;;  %v5621_v57 = vmov 0.0  }
 0x306   :  { %v4027_v49 = vpop.eup %4026 }
 0x307   :  { %v1332_v27 = vmul.f32 %v4027_v49, %v1331_v12 }
 0x309   :  { %v5091_v16 = vadd.f32 %v1333_v19, %v1332_v27 }
 0x30b   :  { %1335 = vst [vmem:[#allocation18] sm:$0xff] %v5091_v16  ;;  %1407 = vmatmul.mubr.f32.vlgmr.msra.gmra.mrb[10].mxu1 %v5091_v16  ;;  %3246 = vmatmul.mubr.f32.vlgmr.msra.gmra.mrb[34].mxu0 %v5091_v16 }
 0x30c   :  { %3573 = vmatpush1.bf16.msra.mxu1 %v4868_v35  ;;  %3604 = vmatpush3.bf16.msra.mxu0 %v4934_v24 }
 0x30d   :  { %3575 = vmatprep.subr.bf16.mxu1 %v4870_v37  ;;  %3605 = vmatprep.subr.bf16.mxu0 %v5620_v0 }
 0x30e   :  { %1577 = vmatprep.mubr.f32.mxu1 %v5621_v57  ;;  %3280 = vmatprep.mubr.msk.f32.mxu0 %vm4453_vm7, %v5621_v57 }
 0x310   :  { %3577 = vmatpush1.bf16.msra.mxu1 %v4879_v30  ;;  %3607 = vmatpush3.bf16.msra.mxu0 %v4944_v10 }
 0x311   :  { %3579 = vmatprep.subr.bf16.mxu1 %v4883_v59  ;;  %3608 = vmatprep.subr.bf16.mxu0 %v5620_v0 }
 0x314   :  { %3581 = vmatpush1.bf16.msra.mxu1 %v4887_v50  ;;  %3610 = vmatpush3.bf16.msra.mxu0 %v4952_v14 }
 0x315   :  { %3583 = vmatprep.subr.bf16.mxu1 %v4892_v52  ;;  %3611 = vmatprep.subr.bf16.mxu0 %v5620_v0 }
 0x318   :  { %3585 = vmatpush1.bf16.msra.mxu1 %v4900_v56  ;;  %3613 = vmatpush3.bf16.msra.mxu0 %v4960_v17 }
 0x319   :  { %3587 = vmatprep.subr.bf16.mxu1 %v4904_v60  ;;  %3614 = vmatprep.subr.bf16.mxu0 %v5620_v0 }
 0x31c   :  { %3589 = vmatpush1.bf16.msra.mxu1 %v4907_v2  ;;  %3616 = vmatpush3.bf16.msra.mxu0 %v4967_v39 }
 0x31d   :  { %3591 = vmatprep.subr.bf16.mxu1 %v4910_v3  ;;  %3617 = vmatprep.subr.bf16.mxu0 %v5620_v0 }
 0x320   :  { %3593 = vmatpush1.bf16.msra.mxu1 %v4916_v8  ;;  %3619 = vmatpush3.bf16.msra.mxu0 %v4975_v41 }
 0x321   :  { %3595 = vmatprep.subr.bf16.mxu1 %v4919_v9  ;;  %3620 = vmatprep.subr.bf16.mxu0 %v5620_v0 }
 0x324   :  { %3597 = vmatpush1.bf16.msra.mxu1 %v4922_v18  ;;  %3622 = vmatpush3.bf16.msra.mxu0 %v4982_v45 }
 0x325   :  { %3599 = vmatprep.subr.bf16.mxu1 %v4925_v11  ;;  %3623 = vmatprep.subr.bf16.mxu0 %v5620_v0 }
 0x328   :  { %3601 = vmatpush1.bf16.msra.mxu1 %v4931_v21  ;;  %3625 = vmatpush3.bf16.msra.mxu0 %v4990_v47 }
 0x329   :  { %3627 = vmatprep.subr.bf16.mxu1 %v4844_v1  ;;  %3658 = vmatprep.subr.bf16.mxu0 %v5620_v0 }
 0x3de   :  { %v1408_v49 = vpop.f32.mrb[10].mxu1  ;;  %v1479_v25 = vpop.f32.mrb[34].mxu0 }
 0x3df   :  { %v1483_v44 = vadd.f32 %v1408_v49, %v5057_v40  ;;  %v1410_v58 = vpop.f32.mrb[11].mxu1  ;;  %v3247_v22 = vpop.f32.mrb[35].mxu0  ;;  %v1497_v12 = vadd.f32 %v5085_v38, %v1479_v25 }
 0x3e0   :  { %v1490_v33 = vadd.f32 %v1410_v58, %v5059_v34 }
 0x3e1   :  { %v2937_v29 = vmul.f32 -1.442695, %v1483_v44 }
 0x3e2   :  { %v2938_v42 = vmul.f32 -1.442695, %v1490_v33 }
 0x3e3   :  { %4028 = vpow2.f32 %v2937_v29 }
 0x3e4   :  { %4030 = vpow2.f32 %v2938_v42 }
 0x3ed   :  { %v4029_v43 = vpop.eup %4028 }
 0x3ee   :  { %v1487_v53 = vadd.f32 1.0, %v4029_v43  ;;  %v4031_v46 = vpop.eup %4030 }
 0x3ef   :  { %v1494_v26 = vadd.f32 1.0, %v4031_v46 }
 0x3f0   :  { %4032 = vrcp.f32 %v1487_v53 }
 0x3f1   :  { %4034 = vrcp.f32 %v1494_v26 }
 0x3fa   :  { %v4033_v27 = vpop.eup %4032 }
 0x3fb   :  { %v1498_v19 = vmul.f32 %v4033_v27, %v1497_v12  ;;  %v4035_v49 = vpop.eup %4034 }
 0x3fc   :  { %v1501_v22 = vsub.f32 1.0, %v4035_v49  ;;  %v1503_v58 = vmul.f32 %v4035_v49, %v5091_v16 }
 0x3fd   :  { %v1499_v40 = vadd.f32 %v1498_v19, %v5037_v5 }
 0x3ff   :  { %4036 = vtanh.f32 %v1499_v40 }
 0x409   :  { %v4037_v34 = vpop.eup %4036 }
 0x40a   :  { %v1502_v44 = vmul.f32 %v4037_v34, %v1501_v22 }
 0x40c   :  { %v5136_v33 = vadd.f32 %v1503_v58, %v1502_v44 }
 0x40e   :  { %1506 = vst [vmem:[#allocation18 + $0x8] sm:$0xff] %v5136_v33  ;;  %1578 = vmatmul.mubr.f32.vlgmr.msra.gmra.mrb[12].mxu1 %v5136_v33  ;;  %3281 = vmatmul.mubr.f32.vlgmr.msra.gmra.mrb[36].mxu0 %v5136_v33 }
 0x40f   :  { %3629 = vmatpush1.bf16.msra.mxu1 %v4868_v35  ;;  %3660 = vmatpush3.bf16.msra.mxu0 %v4934_v24 }
 0x410   :  { %3631 = vmatprep.subr.bf16.mxu1 %v4870_v37  ;;  %3661 = vmatprep.subr.bf16.mxu0 %v5620_v0 }
 0x411   :  { %1748 = vmatprep.mubr.f32.mxu1 %v5621_v57  ;;  %3315 = vmatprep.mubr.msk.f32.mxu0 %vm4453_vm7, %v5621_v57 }
 0x413   :  { %3633 = vmatpush1.bf16.msra.mxu1 %v4879_v30  ;;  %3663 = vmatpush3.bf16.msra.mxu0 %v4944_v10 }
 0x414   :  { %3635 = vmatprep.subr.bf16.mxu1 %v4883_v59  ;;  %3664 = vmatprep.subr.bf16.mxu0 %v5620_v0 }
 0x417   :  { %3637 = vmatpush1.bf16.msra.mxu1 %v4887_v50  ;;  %3666 = vmatpush3.bf16.msra.mxu0 %v4952_v14 }
 0x418   :  { %3639 = vmatprep.subr.bf16.mxu1 %v4892_v52  ;;  %3667 = vmatprep.subr.bf16.mxu0 %v5620_v0 }
 0x41b   :  { %3641 = vmatpush1.bf16.msra.mxu1 %v4900_v56  ;;  %3669 = vmatpush3.bf16.msra.mxu0 %v4960_v17 }
 0x41c   :  { %3643 = vmatprep.subr.bf16.mxu1 %v4904_v60  ;;  %3670 = vmatprep.subr.bf16.mxu0 %v5620_v0 }
 0x41f   :  { %3645 = vmatpush1.bf16.msra.mxu1 %v4907_v2  ;;  %3672 = vmatpush3.bf16.msra.mxu0 %v4967_v39 }
 0x420   :  { %3647 = vmatprep.subr.bf16.mxu1 %v4910_v3  ;;  %3673 = vmatprep.subr.bf16.mxu0 %v5620_v0 }
 0x423   :  { %3649 = vmatpush1.bf16.msra.mxu1 %v4916_v8  ;;  %3675 = vmatpush3.bf16.msra.mxu0 %v4975_v41 }
 0x424   :  { %3651 = vmatprep.subr.bf16.mxu1 %v4919_v9  ;;  %3676 = vmatprep.subr.bf16.mxu0 %v5620_v0 }
 0x427   :  { %3653 = vmatpush1.bf16.msra.mxu1 %v4922_v18  ;;  %3678 = vmatpush3.bf16.msra.mxu0 %v4982_v45 }
 0x428   :  { %3655 = vmatprep.subr.bf16.mxu1 %v4925_v11  ;;  %3679 = vmatprep.subr.bf16.mxu0 %v5620_v0 }
 0x42b   :  { %3657 = vmatpush1.bf16.msra.mxu1 %v4931_v21  ;;  %3681 = vmatpush3.bf16.msra.mxu0 %v4990_v47 }
 0x42c   :  { %3683 = vmatprep.subr.bf16.mxu1 %v4844_v1  ;;  %3714 = vmatprep.subr.bf16.mxu0 %v5620_v0 }
 0x4e1   :  { %v1579_v5 = vpop.f32.mrb[12].mxu1  ;;  %v1650_v25 = vpop.f32.mrb[36].mxu0 }
 0x4e2   :  { %v1654_v29 = vadd.f32 %v1579_v5, %v5061_v55  ;;  %v1581_v42 = vpop.f32.mrb[13].mxu1  ;;  %v3282_v43 = vpop.f32.mrb[37].mxu0  ;;  %v1668_v49 = vadd.f32 %v5085_v38, %v1650_v25 }
 0x4e3   :  { %v1661_v53 = vadd.f32 %v1581_v42, %v5063_v62 }
 0x4e4   :  { %v2939_v46 = vmul.f32 -1.442695, %v1654_v29 }
 0x4e5   :  { %v2940_v26 = vmul.f32 -1.442695, %v1661_v53 }
 0x4e6   :  { %4038 = vpow2.f32 %v2939_v46 }
 0x4e7   :  { %4040 = vpow2.f32 %v2940_v26 }
 0x4f0   :  { %v4039_v12 = vpop.eup %4038 }
 0x4f1   :  { %v1658_v27 = vadd.f32 1.0, %v4039_v12  ;;  %v4041_v19 = vpop.eup %4040 }
 0x4f2   :  { %v1665_v40 = vadd.f32 1.0, %v4041_v19 }
 0x4f3   :  { %4042 = vrcp.f32 %v1658_v27 }
 0x4f4   :  { %4044 = vrcp.f32 %v1665_v40 }
 0x4fd   :  { %v4043_v22 = vpop.eup %4042 }
 0x4fe   :  { %v1669_v34 = vmul.f32 %v4043_v22, %v1668_v49  ;;  %v4045_v44 = vpop.eup %4044 }
 0x4ff   :  { %v1672_v58 = vsub.f32 1.0, %v4045_v44  ;;  %v1674_v29 = vmul.f32 %v4045_v44, %v5136_v33 }
 0x500   :  { %v1670_v55 = vadd.f32 %v1669_v34, %v5029_v61 }
 0x502   :  { %4046 = vtanh.f32 %v1670_v55 }
 0x50c   :  { %v4047_v62 = vpop.eup %4046 }
 0x50d   :  { %v1673_v5 = vmul.f32 %v4047_v62, %v1672_v58 }
 0x50f   :  { %v5181_v42 = vadd.f32 %v1674_v29, %v1673_v5 }
 0x511   :  { %1677 = vst [vmem:[#allocation18 + $0x10] sm:$0xff] %v5181_v42  ;;  %1749 = vmatmul.mubr.f32.vlgmr.msra.gmra.mrb[14].mxu1 %v5181_v42  ;;  %3316 = vmatmul.mubr.f32.vlgmr.msra.gmra.mrb[38].mxu0 %v5181_v42 }
 0x512   :  { %3685 = vmatpush1.bf16.msra.mxu1 %v4868_v35  ;;  %3716 = vmatpush3.bf16.msra.mxu0 %v4934_v24 }
 0x513   :  { %3687 = vmatprep.subr.bf16.mxu1 %v4870_v37  ;;  %3717 = vmatprep.subr.bf16.mxu0 %v5620_v0 }
 0x514   :  { %1919 = vmatprep.mubr.f32.mxu1 %v5621_v57  ;;  %3350 = vmatprep.mubr.msk.f32.mxu0 %vm4453_vm7, %v5621_v57 }
 0x516   :  { %3689 = vmatpush1.bf16.msra.mxu1 %v4879_v30  ;;  %3719 = vmatpush3.bf16.msra.mxu0 %v4944_v10 }
 0x517   :  { %3691 = vmatprep.subr.bf16.mxu1 %v4883_v59  ;;  %3720 = vmatprep.subr.bf16.mxu0 %v5620_v0 }
 0x51a   :  { %3693 = vmatpush1.bf16.msra.mxu1 %v4887_v50  ;;  %3722 = vmatpush3.bf16.msra.mxu0 %v4952_v14 }
 0x51b   :  { %3695 = vmatprep.subr.bf16.mxu1 %v4892_v52  ;;  %3723 = vmatprep.subr.bf16.mxu0 %v5620_v0 }
 0x51e   :  { %3697 = vmatpush1.bf16.msra.mxu1 %v4900_v56  ;;  %3725 = vmatpush3.bf16.msra.mxu0 %v4960_v17 }
 0x51f   :  { %3699 = vmatprep.subr.bf16.mxu1 %v4904_v60  ;;  %3726 = vmatprep.subr.bf16.mxu0 %v5620_v0 }
 0x522   :  { %3701 = vmatpush1.bf16.msra.mxu1 %v4907_v2  ;;  %3728 = vmatpush3.bf16.msra.mxu0 %v4967_v39 }
 0x523   :  { %3703 = vmatprep.subr.bf16.mxu1 %v4910_v3  ;;  %3729 = vmatprep.subr.bf16.mxu0 %v5620_v0 }
 0x526   :  { %3705 = vmatpush1.bf16.msra.mxu1 %v4916_v8  ;;  %3731 = vmatpush3.bf16.msra.mxu0 %v4975_v41 }
 0x527   :  { %3707 = vmatprep.subr.bf16.mxu1 %v4919_v9  ;;  %3732 = vmatprep.subr.bf16.mxu0 %v5620_v0 }
 0x52a   :  { %3709 = vmatpush1.bf16.msra.mxu1 %v4922_v18  ;;  %3734 = vmatpush3.bf16.msra.mxu0 %v4982_v45 }
 0x52b   :  { %3711 = vmatprep.subr.bf16.mxu1 %v4925_v11  ;;  %3735 = vmatprep.subr.bf16.mxu0 %v5620_v0 }
 0x52e   :  { %3713 = vmatpush1.bf16.msra.mxu1 %v4931_v21  ;;  %3737 = vmatpush3.bf16.msra.mxu0 %v4990_v47 }
 0x52f   :  { %3739 = vmatprep.subr.bf16.mxu1 %v4844_v1  ;;  %3770 = vmatprep.subr.bf16.mxu0 %v5620_v0 }
 0x5e4   :  { %v1750_v61 = vpop.f32.mrb[14].mxu1  ;;  %v1821_v25 = vpop.f32.mrb[38].mxu0 }
 0x5e5   :  { %v1825_v43 = vadd.f32 %v1750_v61, %v5065_v6  ;;  %v1752_v53 = vpop.f32.mrb[15].mxu1  ;;  %v3317_v46 = vpop.f32.mrb[39].mxu0  ;;  %v1839_v34 = vadd.f32 %v5085_v38, %v1821_v25 }
 0x5e6   :  { %v1832_v26 = vadd.f32 %v1752_v53, %v5067_v15 }
 0x5e7   :  { %v2941_v12 = vmul.f32 -1.442695, %v1825_v43 }
 0x5e8   :  { %v2942_v27 = vmul.f32 -1.442695, %v1832_v26 }
 0x5e9   :  { %4048 = vpow2.f32 %v2941_v12 }
 0x5ea   :  { %4050 = vpow2.f32 %v2942_v27 }
 0x5f3   :  { %v4049_v19 = vpop.eup %4048 }
 0x5f4   :  { %v1829_v40 = vadd.f32 1.0, %v4049_v19  ;;  %v4051_v49 = vpop.eup %4050 }
 0x5f5   :  { %v1836_v22 = vadd.f32 1.0, %v4051_v49 }
 0x5f6   :  { %4052 = vrcp.f32 %v1829_v40 }
 0x5f7   :  { %4054 = vrcp.f32 %v1836_v22 }
 0x600   :  { %v4053_v55 = vpop.eup %4052 }
 0x601   :  { %v1840_v44 = vmul.f32 %v4053_v55, %v1839_v34  ;;  %v4055_v58 = vpop.eup %4054 }
 0x602   :  { %v1843_v62 = vsub.f32 1.0, %v4055_v58  ;;  %v1845_v29 = vmul.f32 %v4055_v58, %v5181_v42 }
 0x603   :  { %v1841_v6 = vadd.f32 %v1840_v44, %v5034_v63 }
 0x605   :  { %4056 = vtanh.f32 %v1841_v6 }
 0x60f   :  { %v4057_v15 = vpop.eup %4056 }
 0x610   :  { %v1844_v5 = vmul.f32 %v4057_v15, %v1843_v62 }
 0x612   :  { %v5226_v61 = vadd.f32 %v1845_v29, %v1844_v5 }
 0x614   :  { %1848 = vst [vmem:[#allocation18 + $0x18] sm:$0xff] %v5226_v61  ;;  %1920 = vmatmul.mubr.f32.vlgmr.msra.gmra.mrb[16].mxu1 %v5226_v61  ;;  %3351 = vmatmul.mubr.f32.vlgmr.msra.gmra.mrb[40].mxu0 %v5226_v61 }
 0x615   :  { %3741 = vmatpush1.bf16.msra.mxu1 %v4868_v35  ;;  %3772 = vmatpush3.bf16.msra.mxu0 %v4934_v24 }
 0x616   :  { %3743 = vmatprep.subr.bf16.mxu1 %v4870_v37  ;;  %3773 = vmatprep.subr.bf16.mxu0 %v5620_v0 }
 0x617   :  { %2090 = vmatprep.mubr.f32.mxu1 %v5621_v57  ;;  %3385 = vmatprep.mubr.msk.f32.mxu0 %vm4453_vm7, %v5621_v57 }
 0x619   :  { %3745 = vmatpush1.bf16.msra.mxu1 %v4879_v30  ;;  %3775 = vmatpush3.bf16.msra.mxu0 %v4944_v10 }
 0x61a   :  { %3747 = vmatprep.subr.bf16.mxu1 %v4883_v59  ;;  %3776 = vmatprep.subr.bf16.mxu0 %v5620_v0 }
 0x61d   :  { %3749 = vmatpush1.bf16.msra.mxu1 %v4887_v50  ;;  %3778 = vmatpush3.bf16.msra.mxu0 %v4952_v14 }
 0x61e   :  { %3751 = vmatprep.subr.bf16.mxu1 %v4892_v52  ;;  %3779 = vmatprep.subr.bf16.mxu0 %v5620_v0 }
 0x621   :  { %3753 = vmatpush1.bf16.msra.mxu1 %v4900_v56  ;;  %3781 = vmatpush3.bf16.msra.mxu0 %v4960_v17 }
 0x622   :  { %3755 = vmatprep.subr.bf16.mxu1 %v4904_v60  ;;  %3782 = vmatprep.subr.bf16.mxu0 %v5620_v0 }
 0x625   :  { %3757 = vmatpush1.bf16.msra.mxu1 %v4907_v2  ;;  %3784 = vmatpush3.bf16.msra.mxu0 %v4967_v39 }
 0x626   :  { %3759 = vmatprep.subr.bf16.mxu1 %v4910_v3  ;;  %3785 = vmatprep.subr.bf16.mxu0 %v5620_v0 }
 0x629   :  { %3761 = vmatpush1.bf16.msra.mxu1 %v4916_v8  ;;  %3787 = vmatpush3.bf16.msra.mxu0 %v4975_v41 }
 0x62a   :  { %3763 = vmatprep.subr.bf16.mxu1 %v4919_v9  ;;  %3788 = vmatprep.subr.bf16.mxu0 %v5620_v0 }
 0x62d   :  { %3765 = vmatpush1.bf16.msra.mxu1 %v4922_v18  ;;  %3790 = vmatpush3.bf16.msra.mxu0 %v4982_v45 }
 0x62e   :  { %3767 = vmatprep.subr.bf16.mxu1 %v4925_v11  ;;  %3791 = vmatprep.subr.bf16.mxu0 %v5620_v0 }
 0x631   :  { %3769 = vmatpush1.bf16.msra.mxu1 %v4931_v21  ;;  %3793 = vmatpush3.bf16.msra.mxu0 %v4990_v47 }
 0x632   :  { %3795 = vmatprep.subr.bf16.mxu1 %v4844_v1  ;;  %3826 = vmatprep.subr.bf16.mxu0 %v5620_v0 }
 0x6e7   :  { %v1921_v63 = vpop.f32.mrb[16].mxu1  ;;  %v1992_v25 = vpop.f32.mrb[40].mxu0 }
 0x6e8   :  { %v1996_v43 = vadd.f32 %v1921_v63, %v5069_v31  ;;  %v1923_v53 = vpop.f32.mrb[17].mxu1  ;;  %v3352_v46 = vpop.f32.mrb[41].mxu0  ;;  %v2010_v34 = vadd.f32 %v5085_v38, %v1992_v25 }
 0x6e9   :  { %v2003_v26 = vadd.f32 %v1923_v53, %v5071_v36 }
 0x6ea   :  { %v2943_v12 = vmul.f32 -1.442695, %v1996_v43 }
 0x6eb   :  { %v2944_v27 = vmul.f32 -1.442695, %v2003_v26 }
 0x6ec   :  { %4058 = vpow2.f32 %v2943_v12 }
 0x6ed   :  { %4060 = vpow2.f32 %v2944_v27 }
 0x6f6   :  { %v4059_v19 = vpop.eup %4058 }
 0x6f7   :  { %v2000_v40 = vadd.f32 1.0, %v4059_v19  ;;  %v4061_v49 = vpop.eup %4060 }
 0x6f8   :  { %v2007_v22 = vadd.f32 1.0, %v4061_v49 }
 0x6f9   :  { %4062 = vrcp.f32 %v2000_v40 }
 0x6fa   :  { %4064 = vrcp.f32 %v2007_v22 }
 0x703   :  { %v4063_v55 = vpop.eup %4062 }
 0x704   :  { %v2011_v44 = vmul.f32 %v4063_v55, %v2010_v34  ;;  %v4065_v6 = vpop.eup %4064 }
 0x705   :  { %v2014_v58 = vsub.f32 1.0, %v4065_v6  ;;  %v2016_v15 = vmul.f32 %v4065_v6, %v5226_v61 }
 0x706   :  { %v2012_v31 = vadd.f32 %v2011_v44, %v5043_v13 }
 0x708   :  { %4066 = vtanh.f32 %v2012_v31 }
 0x712   :  { %v4067_v36 = vpop.eup %4066 }
 0x713   :  { %v2015_v62 = vmul.f32 %v4067_v36, %v2014_v58  ;;  %v4005_v58 = vld [vmem:[%s5579_s17 + $0x34] ss:$8 sps:$4 sm:$0xff]   ;;  %v4003_v36 = vld [vmem:[%s5579_s17 + $0x30] ss:$8 sps:$4 sm:$0xff]  }
 0x715   :  { %v5271_v5 = vadd.f32 %v2016_v15, %v2015_v62  ;;  %v4008_v62 = vld [vmem:[%s5579_s17 + $0x44] ss:$8 sps:$4 sm:$0xff]   ;;  %v4006_v15 = vld [vmem:[%s5579_s17 + $0x40] ss:$8 sps:$4 sm:$0xff]  }
 0x717   :  { %2019 = vst [vmem:[#allocation18 + $0x20] sm:$0xff] %v5271_v5  ;;  %2091 = vmatmul.mubr.f32.vlgmr.msra.gmra.mrb[18].mxu1 %v5271_v5  ;;  %3386 = vmatmul.mubr.f32.vlgmr.msra.gmra.mrb[42].mxu0 %v5271_v5 }
 0x718   :  { %3797 = vmatpush1.bf16.msra.mxu1 %v4868_v35  ;;  %3828 = vmatpush3.bf16.msra.mxu0 %v4934_v24 }
 0x719   :  { %3799 = vmatprep.subr.bf16.mxu1 %v4870_v37  ;;  %3829 = vmatprep.subr.bf16.mxu0 %v5620_v0 }
 0x71a   :  { %2261 = vmatprep.mubr.f32.mxu1 %v5621_v57  ;;  %3420 = vmatprep.mubr.msk.f32.mxu0 %vm4453_vm7, %v5621_v57 }
 0x71c   :  { %3801 = vmatpush1.bf16.msra.mxu1 %v4879_v30  ;;  %3831 = vmatpush3.bf16.msra.mxu0 %v4944_v10 }
 0x71d   :  { %3803 = vmatprep.subr.bf16.mxu1 %v4883_v59  ;;  %3832 = vmatprep.subr.bf16.mxu0 %v5620_v0 }
 0x720   :  { %3805 = vmatpush1.bf16.msra.mxu1 %v4887_v50  ;;  %3834 = vmatpush3.bf16.msra.mxu0 %v4952_v14 }
 0x721   :  { %3807 = vmatprep.subr.bf16.mxu1 %v4892_v52  ;;  %3835 = vmatprep.subr.bf16.mxu0 %v5620_v0 }
 0x724   :  { %3809 = vmatpush1.bf16.msra.mxu1 %v4900_v56  ;;  %3837 = vmatpush3.bf16.msra.mxu0 %v4960_v17 }
 0x725   :  { %3811 = vmatprep.subr.bf16.mxu1 %v4904_v60  ;;  %3838 = vmatprep.subr.bf16.mxu0 %v5620_v0 }
 0x728   :  { %3813 = vmatpush1.bf16.msra.mxu1 %v4907_v2  ;;  %3840 = vmatpush3.bf16.msra.mxu0 %v4967_v39 }
 0x729   :  { %3815 = vmatprep.subr.bf16.mxu1 %v4910_v3  ;;  %3841 = vmatprep.subr.bf16.mxu0 %v5620_v0 }
 0x72c   :  { %3817 = vmatpush1.bf16.msra.mxu1 %v4916_v8  ;;  %3843 = vmatpush3.bf16.msra.mxu0 %v4975_v41 }
 0x72d   :  { %3819 = vmatprep.subr.bf16.mxu1 %v4919_v9  ;;  %3844 = vmatprep.subr.bf16.mxu0 %v5620_v0 }
 0x730   :  { %3821 = vmatpush1.bf16.msra.mxu1 %v4922_v18  ;;  %3846 = vmatpush3.bf16.msra.mxu0 %v4982_v45 }
 0x731   :  { %3823 = vmatprep.subr.bf16.mxu1 %v4925_v11  ;;  %3847 = vmatprep.subr.bf16.mxu0 %v5620_v0 }
 0x734   :  { %3825 = vmatpush1.bf16.msra.mxu1 %v4931_v21  ;;  %3849 = vmatpush3.bf16.msra.mxu0 %v4990_v47 }
 0x735   :  { %3851 = vmatprep.subr.bf16.mxu1 %v4844_v1  ;;  %3882 = vmatprep.subr.bf16.mxu0 %v5620_v0 }
 0x7ea   :  { %v2092_v13 = vpop.f32.mrb[18].mxu1  ;;  %v2163_v29 = vpop.f32.mrb[42].mxu0 }
 0x7eb   :  { %v2167_v63 = vadd.f32 %v2092_v13, %v5073_v32  ;;  %v2094_v25 = vpop.f32.mrb[19].mxu1  ;;  %v3387_v43 = vpop.f32.mrb[43].mxu0  ;;  %v2181_v1 = vadd.f32 %v5085_v38, %v2163_v29  ;;  %v4011_v13 = vld [vmem:[%s5579_s17 + $0x54] ss:$8 sps:$4 sm:$0xff]   ;;  %v4009_v29 = vld [vmem:[%s5579_s17 + $0x50] ss:$8 sps:$4 sm:$0xff]  }
 0x7ec   :  { %v2174_v53 = vadd.f32 %v2094_v25, %v5075_v48  ;;  %v4012_v25 = vld [vmem:[%s5579_s17 + $0x60] ss:$8 sps:$4 sm:$0xff]   ;;  %v4017_v43 = vld [vmem:[%s5579_s17 + $0x74] ss:$8 sps:$4 sm:$0xff]  }
 0x7ed   :  { %v2945_v46 = vmul.f32 -1.442695, %v2167_v63  ;;  %v4014_v63 = vld [vmem:[%s5579_s17 + $0x64] ss:$8 sps:$4 sm:$0xff]  }
 0x7ee   :  { %v2946_v26 = vmul.f32 -1.442695, %v2174_v53  ;;  %v4015_v53 = vld [vmem:[%s5579_s17 + $0x70] ss:$8 sps:$4 sm:$0xff]  }
 0x7ef   :  { %4068 = vpow2.f32 %v2945_v46  ;;  %v2542_v46 = vpack.c.bf16 %v5136_v33, %v5091_v16 }
 0x7f0   :  { %4070 = vpow2.f32 %v2946_v26  ;;  %v2543_v26 = vpack.c.bf16 %v5226_v61, %v5181_v42 }
 0x7f9   :  { %v4069_v12 = vpop.eup %4068 }
 0x7fa   :  { %v2171_v27 = vadd.f32 1.0, %v4069_v12  ;;  %v4071_v19 = vpop.eup %4070 }
 0x7fb   :  { %v2178_v40 = vadd.f32 1.0, %v4071_v19 }
 0x7fc   :  { %4072 = vrcp.f32 %v2171_v27 }
 0x7fd   :  { %4074 = vrcp.f32 %v2178_v40 }
 0x806   :  { %v4073_v49 = vpop.eup %4072 }
 0x807   :  { %v2182_v22 = vmul.f32 %v4073_v49, %v2181_v1  ;;  %v4075_v34 = vpop.eup %4074 }
 0x808   :  { %v2185_v55 = vsub.f32 1.0, %v4075_v34  ;;  %v2187_v31 = vmul.f32 %v4075_v34, %v5271_v5  ;;  %v2562_v34 = vld [vmem:[%s5580_s18] sm:$0x3] }
 0x809   :  { %v2183_v32 = vadd.f32 %v2182_v22, %v5049_v20 }
 0x80b   :  { %4076 = vtanh.f32 %v2183_v32 }
 0x815   :  { %v4077_v48 = vpop.eup %4076 }
 0x816   :  { %v2186_v44 = vmul.f32 %v4077_v48, %v2185_v55 }
 0x818   :  { %v5316_v6 = vadd.f32 %v2187_v31, %v2186_v44  ;;  %v5624_v31 = vsub.s32 1, %v5020_v51 }
 0x81a   :  { %2190 = vst [vmem:[#allocation18 + $0x28] sm:$0xff] %v5316_v6  ;;  %2262 = vmatmul.mubr.f32.vlgmr.msra.gmra.mrb[20].mxu1 %v5316_v6  ;;  %3421 = vmatmul.mubr.f32.vlgmr.msra.gmra.mrb[44].mxu0 %v5316_v6  ;;  %v2544_v12 = vpack.c.bf16 %v5316_v6, %v5271_v5 }
 0x81b   :  { %3853 = vmatpush1.bf16.msra.mxu1 %v4868_v35  ;;  %3884 = vmatpush3.bf16.msra.mxu0 %v4934_v24  ;;  %v3996_v35 = vld [vmem:[%s5579_s17 + $0x4] ss:$8 sps:$4 sm:$0xff]  }
 0x81c   :  { %3855 = vmatprep.subr.bf16.mxu1 %v4870_v37  ;;  %3885 = vmatprep.subr.bf16.mxu0 %v5620_v0 }
 0x81d   :  { %2432 = vmatprep.mubr.f32.mxu1 %v5621_v57  ;;  %3455 = vmatprep.mubr.msk.f32.mxu0 %vm4453_vm7, %v5621_v57  ;;  %v4000_v57 = vld [vmem:[%s5579_s17 + $0x20] ss:$8 sps:$4 sm:$0xff]  }
 0x81f   :  { %3857 = vmatpush1.bf16.msra.mxu1 %v4879_v30  ;;  %3887 = vmatpush3.bf16.msra.mxu0 %v4944_v10 }
 0x820   :  { %3859 = vmatprep.subr.bf16.mxu1 %v4883_v59  ;;  %3888 = vmatprep.subr.bf16.mxu0 %v5620_v0 }
 0x823   :  { %3861 = vmatpush1.bf16.msra.mxu1 %v4887_v50  ;;  %3890 = vmatpush3.bf16.msra.mxu0 %v4952_v14 }
 0x824   :  { %3863 = vmatprep.subr.bf16.mxu1 %v4892_v52  ;;  %3891 = vmatprep.subr.bf16.mxu0 %v5620_v0 }
 0x827   :  { %3865 = vmatpush1.bf16.msra.mxu1 %v4900_v56  ;;  %3893 = vmatpush3.bf16.msra.mxu0 %v4960_v17 }
 0x828   :  { %3867 = vmatprep.subr.bf16.mxu1 %v4904_v60  ;;  %3894 = vmatprep.subr.bf16.mxu0 %v5620_v0 }
 0x82b   :  { %3869 = vmatpush1.bf16.msra.mxu1 %v4907_v2  ;;  %3896 = vmatpush3.bf16.msra.mxu0 %v4967_v39 }
 0x82c   :  { %3871 = vmatprep.subr.bf16.mxu1 %v4910_v3  ;;  %3897 = vmatprep.subr.bf16.mxu0 %v5620_v0 }
 0x82f   :  { %3873 = vmatpush1.bf16.msra.mxu1 %v4916_v8  ;;  %3899 = vmatpush3.bf16.msra.mxu0 %v4975_v41 }
 0x830   :  { %3875 = vmatprep.subr.bf16.mxu1 %v4919_v9  ;;  %3900 = vmatprep.subr.bf16.mxu0 %v5620_v0 }
 0x833   :  { %3877 = vmatpush1.bf16.msra.mxu1 %v4922_v18  ;;  %3902 = vmatpush3.bf16.msra.mxu0 %v4982_v45 }
 0x834   :  { %3879 = vmatprep.subr.bf16.mxu1 %v4925_v11  ;;  %3903 = vmatprep.subr.bf16.mxu0 %v5620_v0  ;;  %v4002_v0 = vld [vmem:[%s5579_s17 + $0x24] ss:$8 sps:$4 sm:$0xff]  }
 0x837   :  { %3881 = vmatpush1.bf16.msra.mxu1 %v4931_v21  ;;  %3905 = vmatpush3.bf16.msra.mxu0 %v4990_v47  ;;  %v3994_v47 = vld [vmem:[%s5579_s17] ss:$8 sps:$4 sm:$0xff]  }
 0x838   :  { %2654 = vmatprep.subr.bf16.mxu1 %v3996_v35  ;;  %v5625_v35 = vld [vmem:[#allocation33_spill] sm:$0xff] }
 0x8ed   :  { %v2263_v37 = vpop.f32.mrb[20].mxu1  ;;  %v2334_v30 = vpop.f32.mrb[44].mxu0 }
 0x8ee   :  { %v2338_v59 = vadd.f32 %v2263_v37, %v5077_v54  ;;  %v2265_v50 = vpop.f32.mrb[21].mxu1  ;;  %v3422_v52 = vpop.f32.mrb[45].mxu0  ;;  %v2352_v11 = vadd.f32 %v5085_v38, %v2334_v30  ;;  %v3999_v54 = vld [vmem:[%s5579_s17 + $0x14] ss:$8 sps:$4 sm:$0xff]  }
 0x8ef   :  { %v2345_v56 = vadd.f32 %v2265_v50, %v5079_v4  ;;  %v5622_v4 = vmov 0  }
 0x8f0   :  { %v2947_v60 = vmul.f32 -1.442695, %v2338_v59 }
 0x8f1   :  { %v2948_v2 = vmul.f32 -1.442695, %v2345_v56 }
 0x8f2   :  { %4078 = vpow2.f32 %v2947_v60 }
 0x8f3   :  { %4080 = vpow2.f32 %v2948_v2 }
 0x8fc   :  { %v4079_v3 = vpop.eup %4078 }
 0x8fd   :  { %v2342_v8 = vadd.f32 1.0, %v4079_v3  ;;  %v4081_v9 = vpop.eup %4080 }
 0x8fe   :  { %v2349_v18 = vadd.f32 1.0, %v4081_v9 }
 0x8ff   :  { %4082 = vrcp.f32 %v2342_v8 }
 0x900   :  { %4084 = vrcp.f32 %v2349_v18 }
 0x909   :  { %v4083_v21 = vpop.eup %4082 }
 0x90a   :  { %v2353_v24 = vmul.f32 %v4083_v21, %v2352_v11  ;;  %v4085_v14 = vpop.eup %4084 }
 0x90b   :  { %v2356_v17 = vsub.f32 1.0, %v4085_v14  ;;  %v2358_v45 = vmul.f32 %v4085_v14, %v5316_v6  ;;  %v5434_v6 = vrot.slane %v2562_v34, %v5624_v31  ;;  %v2747_v31 = vld [vmem:[%s5626_s25 + $0x20] sm:$0xff] }
 0x90c   :  { %v2354_v10 = vadd.f32 %v2353_v24, %v5040_v7  ;;  %v3997_v7 = vld [vmem:[%s5579_s17 + $0x10] ss:$8 sps:$4 sm:$0xff]  }
 0x90e   :  { %4086 = vtanh.f32 %v2354_v10 }
 0x918   :  { %v4087_v39 = vpop.eup %4086 }
 0x919   :  { %v2357_v41 = vmul.f32 %v4087_v39, %v2356_v17 }
 0x91b   :  { %v5365_v20 = vadd.f32 %v2358_v45, %v2357_v41 }
 0x91d   :  { %2361 = vst [vmem:[#allocation18 + $0x30] sm:$0xff] %v5365_v20  ;;  %2433 = vmatmul.mubr.f32.vlgmr.msra.gmra.mrb[22].mxu1 %v5365_v20  ;;  %3456 = vmatmul.mubr.f32.vlgmr.msra.gmra.mrb[46].mxu0 %v5365_v20 }
 0x91e   :  { %2655 = vmatpush1.bf16.msra.mxu1 %v3994_v47  ;;  %2686 = vmatprep.mubr.bf16.mxu1 %v5622_v4 }
 0x91f   :  { %2656 = vmatprep.subr.bf16.mxu1 %v3999_v54 }
 0x922   :  { %2657 = vmatpush1.bf16.msra.mxu1 %v3997_v7 }
 0x923   :  { %2658 = vmatprep.subr.bf16.mxu1 %v4002_v0 }
 0x926   :  { %2659 = vmatpush1.bf16.msra.mxu1 %v4000_v57 }
 0x927   :  { %2660 = vmatprep.subr.bf16.mxu1 %v4005_v58 }
 0x92a   :  { %2661 = vmatpush1.bf16.msra.mxu1 %v4003_v36  ;;  %v2743_v36 = vld [vmem:[%s5626_s25] sm:$0xff] }
 0x92b   :  { %2662 = vmatprep.subr.bf16.mxu1 %v4008_v62 }
 0x92e   :  { %2663 = vmatpush1.bf16.msra.mxu1 %v4006_v15 }
 0x92f   :  { %2664 = vmatprep.subr.bf16.mxu1 %v4011_v13 }
 0x932   :  { %2665 = vmatpush1.bf16.msra.mxu1 %v4009_v29 }
 0x933   :  { %2666 = vmatprep.subr.bf16.mxu1 %v4014_v63 }
 0x936   :  { %2667 = vmatpush1.bf16.msra.mxu1 %v4012_v25 }
 0x937   :  { %2668 = vmatprep.subr.bf16.mxu1 %v4017_v43  ;;  %v2744_v43 = vld [vmem:[%s5626_s25 + $0x8] sm:$0xff] }
 0x93a   :  { %2669 = vmatpush1.bf16.msra.mxu1 %v4015_v53 }
 0x93d   :  { %2687 = vmatmul.mubr.bf16.vlgmr.msra.gmra.mrb[24].mxu1 %v2542_v46 }
 0x93e   :  { %2696 = vmatprep.mubr.bf16.mxu1 %v5622_v4 }
 0x945   :  { %2697 = vmatmul.mubr.bf16.gmra.mrb[28].mxu1 %v2543_v26 }
 0x946   :  { %2706 = vmatprep.mubr.bf16.mxu1 %v5622_v4 }
 0x94d   :  { %2707 = vmatmul.mubr.bf16.gmra.mrb[32].mxu1 %v2544_v12 }
 0x94e   :  { %2716 = vmatprep.mubr.bf16.mxu1 %v5622_v4 }
 0x9f0   :  { %v2434_v27 = vpop.f32.mrb[22].mxu1  ;;  %v2505_v19 = vpop.f32.mrb[46].mxu0 }
 0x9f1   :  { %v2509_v40 = vadd.f32 %v2434_v27, %v5081_v28  ;;  %v2436_v16 = vpop.f32.mrb[23].mxu1  ;;  %v3457_v33 = vpop.f32.mrb[47].mxu0  ;;  %v2523_v55 = vadd.f32 %v5085_v38, %v2505_v19 }
 0x9f2   :  { %v2516_v1 = vadd.f32 %v2436_v16, %v5083_v23  ;;  %v5623_v23 = vsub.s32 0, %v5020_v51 }
 0x9f3   :  { %v2949_v49 = vmul.f32 -1.442695, %v2509_v40 }
 0x9f4   :  { %v2950_v42 = vmul.f32 -1.442695, %v2516_v1  ;;  %v5430_v44 = vrot.slane %v2562_v34, %v5623_v23 }
 0x9f5   :  { %4088 = vpow2.f32 %v2949_v49 }
 0x9f6   :  { %4090 = vpow2.f32 %v2950_v42 }
 0x9ff   :  { %v4089_v61 = vpop.eup %4088 }
 0xa00   :  { %v2513_v22 = vadd.f32 1.0, %v4089_v61  ;;  %v4091_v32 = vpop.eup %4090  ;;  %v2745_v61 = vld [vmem:[%s5626_s25 + $0x10] sm:$0xff] }
 0xa01   :  { %v2520_v5 = vadd.f32 1.0, %v4091_v32 }
 0xa02   :  { %4092 = vrcp.f32 %v2513_v22 }
 0xa03   :  { %4094 = vrcp.f32 %v2520_v5  ;;  %v2746_v5 = vld [vmem:[%s5626_s25 + $0x18] sm:$0xff] }
 0xa0c   :  { %v4093_v28 = vpop.eup %4092 }
 0xa0d   :  { %v2524_v48 = vmul.f32 %v4093_v28, %v2523_v55  ;;  %v4095_v9 = vpop.eup %4094 }
 0xa0e   :  { %v2527_v10 = vsub.f32 1.0, %v4095_v9  ;;  %v2529_v54 = vmul.f32 %v4095_v9, %v5365_v20 }
 0xa0f   :  { %v2525_v37 = vadd.f32 %v2524_v48, %v5625_v35 }
 0xa10   :  { %v2688_v30 = vpop.f32.mrb[24].mxu1 }
 0xa11   :  { %4096 = vtanh.f32 %v2525_v37  ;;  %v2689_v59 = vadd.f32 %v2688_v30, %v5430_v44  ;;  %v2690_v50 = vpop.f32.mrb[25].mxu1  ;;  %v2748_v37 = vld [vmem:[%s5626_s25 + $0x28] sm:$0xff] }
 0xa12   :  { %v2691_v38 = vadd.f32 %v2690_v50, %v5434_v6  ;;  %v2692_v52 = vpop.f32.mrb[26].mxu1 }
 0xa13   :  { %2727 = vst [vmem:[#allocation19] sm:$0xff] %v2689_v59  ;;  %v5440_v56 = vadd.f32 %v2692_v52, %v5430_v44  ;;  %v2694_v60 = vpop.f32.mrb[27].mxu1 }
 0xa14   :  { %2735 = vst [vmem:[#allocation21] sm:$0xff] %v2691_v38  ;;  %v2751_v2 = vmul.f32 0.5, %v2691_v38  ;;  %v2695_v51 = vadd.f32 %v2694_v60, %v5434_v6 }
 0xa15   :  { %2728 = vst [vmem:[#allocation19 + $0x8] sm:$0xff] %v5440_v56 }
 0xa16   :  { %v2759_v3 = vmul.f32 1.442695, %v2751_v2  ;;  %2736 = vst [vmem:[#allocation21 + $0x8] sm:$0xff] %v2695_v51  ;;  %v2752_v8 = vmul.f32 0.5, %v2695_v51 }
 0xa18   :  { %4098 = vpow2.f32 %v2759_v3  ;;  %v2761_v18 = vmul.f32 1.442695, %v2752_v8  ;;  %v2698_v11 = vpop.f32.mrb[28].mxu1 }
 0xa19   :  { %v2699_v21 = vadd.f32 %v2698_v11, %v5430_v44  ;;  %v2700_v24 = vpop.f32.mrb[29].mxu1 }
 0xa1a   :  { %4100 = vpow2.f32 %v2761_v18  ;;  %v2701_v14 = vadd.f32 %v2700_v24, %v5434_v6  ;;  %v2702_v17 = vpop.f32.mrb[30].mxu1 }
 0xa1b   :  { %v4097_v39 = vpop.eup %4096  ;;  %2729 = vst [vmem:[#allocation19 + $0x10] sm:$0xff] %v2699_v21  ;;  %v2703_v41 = vadd.f32 %v2702_v17, %v5430_v44  ;;  %v2704_v45 = vpop.f32.mrb[31].mxu1 }
 0xa1c   :  { %v2528_v47 = vmul.f32 %v4097_v39, %v2527_v10  ;;  %2737 = vst [vmem:[#allocation21 + $0x10] sm:$0xff] %v2701_v14  ;;  %v2753_v7 = vmul.f32 0.5, %v2701_v14  ;;  %v2705_v4 = vadd.f32 %v2704_v45, %v5434_v6 }
 0xa1d   :  { %2730 = vst [vmem:[#allocation19 + $0x18] sm:$0xff] %v2703_v41 }
 0xa1e   :  { %v2530_v0 = vadd.f32 %v2529_v54, %v2528_v47  ;;  %v2763_v57 = vmul.f32 1.442695, %v2753_v7  ;;  %2738 = vst [vmem:[#allocation21 + $0x18] sm:$0xff] %v2705_v4  ;;  %v2754_v58 = vmul.f32 0.5, %v2705_v4 }
 0xa20   :  { %2532 = vst [vmem:[#allocation18 + $0x38] sm:$0xff] %v2530_v0  ;;  %2533 = vst [vmem:[#allocation24] sm:$0xff] %v2530_v0  ;;  %4102 = vpow2.f32 %v2763_v57  ;;  %v2765_v62 = vmul.f32 1.442695, %v2754_v58  ;;  %v2708_v15 = vpop.f32.mrb[32].mxu1  ;;  %v2545_v13 = vpack.c.bf16 %v2530_v0, %v5365_v20 }
 0xa21   :  { %v2709_v29 = vadd.f32 %v2708_v15, %v5430_v44  ;;  %v2710_v63 = vpop.f32.mrb[33].mxu1 }
 0xa22   :  { %v4099_v25 = vpop.eup %4098  ;;  %4104 = vpow2.f32 %v2765_v62  ;;  %v2711_v53 = vadd.f32 %v2710_v63, %v5434_v6  ;;  %v2712_v46 = vpop.f32.mrb[34].mxu1  ;;  %2717 = vmatmul.mubr.bf16.gmra.mrb[36].mxu1 %v2545_v13 }
 0xa23   :  { %v2775_v26 = vmul.f32 %v4099_v25, %v2743_v36  ;;  %2731 = vst [vmem:[#allocation19 + $0x20] sm:$0xff] %v2709_v29  ;;  %v2713_v12 = vadd.f32 %v2712_v46, %v5430_v44  ;;  %v2714_v27 = vpop.f32.mrb[35].mxu1 }
 0xa24   :  { %v4101_v19 = vpop.eup %4100  ;;  %2739 = vst [vmem:[#allocation21 + $0x20] sm:$0xff] %v2711_v53  ;;  %v2755_v20 = vmul.f32 0.5, %v2711_v53  ;;  %v2715_v40 = vadd.f32 %v2714_v27, %v5434_v6 }
 0xa25   :  { %v2783_v16 = vadd.f32 %v2775_v26, %v2689_v59  ;;  %v2776_v33 = vmul.f32 %v4101_v19, %v2744_v43  ;;  %2732 = vst [vmem:[#allocation19 + $0x28] sm:$0xff] %v2713_v12 }
 0xa26   :  { %v2767_v1 = vmul.f32 1.442695, %v2755_v20  ;;  %2740 = vst [vmem:[#allocation21 + $0x28] sm:$0xff] %v2715_v40  ;;  %v2756_v49 = vmul.f32 0.5, %v2715_v40 }
 0xa27   :  { %2791 = vst [vmem:[#allocation22] sm:$0xff] %v2783_v16  ;;  %v2784_v42 = vadd.f32 %v2776_v33, %v5440_v56 }
 0xa28   :  { %4106 = vpow2.f32 %v2767_v1  ;;  %v2769_v22 = vmul.f32 1.442695, %v2756_v49 }
 0xa29   :  { %2792 = vst [vmem:[#allocation22 + $0x8] sm:$0xff] %v2784_v42 }
 0xa2a   :  { %v4103_v32 = vpop.eup %4102  ;;  %4108 = vpow2.f32 %v2769_v22 }
 0xa2b   :  { %v2777_v34 = vmul.f32 %v4103_v32, %v2745_v61 }
 0xa2c   :  { %v4105_v55 = vpop.eup %4104 }
 0xa2d   :  { %v2785_v28 = vadd.f32 %v2777_v34, %v2699_v21  ;;  %v2778_v48 = vmul.f32 %v4105_v55, %v2746_v5 }
 0xa2f   :  { %2793 = vst [vmem:[#allocation22 + $0x10] sm:$0xff] %v2785_v28  ;;  %v2786_v23 = vadd.f32 %v2778_v48, %v2703_v41 }
 0xa31   :  { %2794 = vst [vmem:[#allocation22 + $0x18] sm:$0xff] %v2786_v23 }
 0xa32   :  { %v4107_v35 = vpop.eup %4106 }
 0xa33   :  { %v2779_v30 = vmul.f32 %v4107_v35, %v2747_v31 }
 0xa34   :  { %v4109_v59 = vpop.eup %4108 }
 0xa35   :  { %v2787_v50 = vadd.f32 %v2779_v30, %v2709_v29  ;;  %v2780_v38 = vmul.f32 %v4109_v59, %v2748_v37 }
 0xa37   :  { %2795 = vst [vmem:[#allocation22 + $0x20] sm:$0xff] %v2787_v50  ;;  %v2788_v52 = vadd.f32 %v2780_v38, %v2713_v12 }
 0xa39   :  { %2796 = vst [vmem:[#allocation22 + $0x28] sm:$0xff] %v2788_v52 }
 0xa3a   :  { %4323 = shalt.err (!%p4320_p6)
}
 0xa3b   :  { %s4324_s14 = scalar_lea.hbm %s5581_s19, 1024 }
 0xa3c   :  { %p4325_p7 = scmp.ne.s32.totalorder %s5581_s19, %s4324_s14  ;;  %p4328_p8 = scmp.lt.u32.totalorder %s4324_s14, %s5581_s19 }
 0xa3e   :  { %p4330_p9 = pnand %p4328_p8, %p4325_p7 }
 0xa40   :  { %4333 = shalt.err (!%p4330_p9)
}
 0xa41   :  { %s4455_s23 = smov 128   ;;  %s4456_s24 = smov 8  }
 0xa42   :  { %2810 = dma.vmem_to_hbm [thread:$0]  %s2805_s4, 1024, %s5581_s19, [#allocation5], %s4455_s23, %s4455_s23, %s4456_s24  }
 0xa43   :  { %s4457_s18 = smov [#allocation19]   ;;  %s4458_s6 = smov [#allocation21]  }
 0xa44   :  { %s2816_s0 = sshll.u32 %s4457_s18, 4  ;;  %s2828_s3 = sshll.u32 %s4458_s6, 4  ;;  %s2817_s0 = int_to_ptr.vmem [resolvable:$true] %s2816_s0  ;;  %s5492_s3 = int_to_ptr.vmem [resolvable:$true] %s2828_s3 }
 0xa45   :  { %s4334_s19 = scalar_lea.vmem %s2817_s0, 1024  ;;  %p4339_p11 = scmp.lt.s32.totalorder %s2817_s0, %s2817_s0 }
 0xa46   :  { %p4335_p10 = scmp.ne.s32.totalorder %s2817_s0, %s4334_s19  ;;  %p4340_p12 = scmp.lt.s32.totalorder %s4334_s19, %s4334_s19 }
 0xa48   :  { %p4341_p13 = por %p4340_p12, %p4339_p11 }
 0xa4a   :  { %p4342_p0 = pnand %p4341_p13, %p4335_p10 }
 0xaf5   :  { %v2718_v56 = vpop.f32.mrb[36].mxu1 }
 0xaf6   :  { %v2719_v60 = vadd.f32 %v2718_v56, %v5430_v44  ;;  %v2720_v2 = vpop.f32.mrb[37].mxu1 }
 0xaf7   :  { %v2721_v51 = vadd.f32 %v2720_v2, %v5434_v6  ;;  %v2722_v3 = vpop.f32.mrb[38].mxu1 }
 0xaf8   :  { %2733 = vst [vmem:[#allocation19 + $0x30] sm:$0xff] %v2719_v60  ;;  %v2723_v8 = vadd.f32 %v2722_v3, %v5430_v44  ;;  %v2724_v9 = vpop.f32.mrb[39].mxu1 }
 0xaf9   :  { %2741 = vst [vmem:[#allocation21 + $0x30] sm:$0xff] %v2721_v51  ;;  %v2757_v18 = vmul.f32 0.5, %v2721_v51  ;;  %v2725_v11 = vadd.f32 %v2724_v9, %v5434_v6 }
 0xafa   :  { %2734 = vst [vmem:[#allocation19 + $0x38] sm:$0xff] %v2723_v8 }
 0xafb   :  { %v2771_v21 = vmul.f32 1.442695, %v2757_v18  ;;  %2742 = vst [vmem:[#allocation21 + $0x38] sm:$0xff] %v2725_v11  ;;  %v2758_v24 = vmul.f32 0.5, %v2725_v11 }
 0xafc   :  { %4345 = shalt.err (!%p4342_p0)
}
 0xafd   :  { %s4346_s30 = scalar_lea.hbm %s5582_s20, 1024 }
 0xafe   :  { %p4347_p1 = scmp.ne.s32.totalorder %s5582_s20, %s4346_s30  ;;  %p4350_p2 = scmp.lt.u32.totalorder %s4346_s30, %s5582_s20 }
 0xb00   :  { %p4352_p3 = pnand %p4350_p2, %p4347_p1 }
 0xb02   :  { %4355 = shalt.err (!%p4352_p3)
}
 0xb03   :  { %2822 = dma.vmem_to_hbm [thread:$0]  %s2817_s0, 1024, %s5582_s20, [#allocation20], %s4455_s23, %s4455_s23, %s4456_s24  }
 0xb04   :  { %s4356_s4 = scalar_lea.vmem %s5492_s3, 1024  ;;  %p4361_p5 = scmp.lt.s32.totalorder %s5492_s3, %s5492_s3 }
 0xb05   :  { %p4357_p4 = scmp.ne.s32.totalorder %s5492_s3, %s4356_s4  ;;  %p4362_p6 = scmp.lt.s32.totalorder %s4356_s4, %s4356_s4 }
 0xb07   :  { %p4363_p7 = por %p4362_p6, %p4361_p5 }
 0xb09   :  { %p4364_p8 = pnand %p4363_p7, %p4357_p4 }
 0xb0b   :  { %4367 = shalt.err (!%p4364_p8)
}
 0xb0c   :  { %s4368_s13 = scalar_lea.hbm %s5583_s21, 1024 }
 0xb0d   :  { %p4369_p9 = scmp.ne.s32.totalorder %s5583_s21, %s4368_s13  ;;  %p4372_p10 = scmp.lt.u32.totalorder %s4368_s13, %s5583_s21 }
 0xb0f   :  { %p4374_p11 = pnand %p4372_p10, %p4369_p9 }
 0xb11   :  { %4377 = shalt.err (!%p4374_p11)
}
 0xb12   :  { %2834 = dma.vmem_to_hbm [thread:$0]  %s5492_s3, 1024, %s5583_s21, [#allocation20], %s4455_s23, %s4455_s23, %s4456_s24   ;;  %4110 = vpow2.f32 %v2771_v21  ;;  %v2773_v44 = vmul.f32 1.442695, %v2758_v24 }
 0xb13   :  { %v2749_v6 = vld [vmem:[%s5626_s25 + $0x30] sm:$0xff]  ;;  %v2750_v14 = vld [vmem:[%s5626_s25 + $0x38] sm:$0xff]  ;;  %s4459_s6 = smov [#allocation22]   ;;  %s4460_s2 = smov [#allocation24]  }
 0xb14   :  { %4112 = vpow2.f32 %v2773_v44  ;;  %s2840_s19 = sshll.u32 %s4459_s6, 4  ;;  %s2853_s21 = sshll.u32 %s4460_s2, 4  ;;  %s2841_s19 = int_to_ptr.vmem [resolvable:$true] %s2840_s19  ;;  %s2854_s21 = int_to_ptr.vmem [resolvable:$true] %s2853_s21 }
 0xb15   :  { %s4378_s3 = scalar_lea.vmem %s2841_s19, 1024  ;;  %p4383_p13 = scmp.lt.s32.totalorder %s2841_s19, %s2841_s19 }
 0xb16   :  { %p4379_p12 = scmp.ne.s32.totalorder %s2841_s19, %s4378_s3  ;;  %p4384_p0 = scmp.lt.s32.totalorder %s4378_s3, %s4378_s3 }
 0xb18   :  { %p4385_p1 = por %p4384_p0, %p4383_p13 }
 0xb1a   :  { %p4386_p2 = pnand %p4385_p1, %p4379_p12 }
 0xb1c   :  { %v4111_v10 = vpop.eup %4110 }
 0xb1d   :  { %v2781_v17 = vmul.f32 %v4111_v10, %v2749_v6 }
 0xb1e   :  { %v4113_v39 = vpop.eup %4112 }
 0xb1f   :  { %v2789_v41 = vadd.f32 %v2781_v17, %v2719_v60  ;;  %v2782_v45 = vmul.f32 %v4113_v39, %v2750_v14 }
 0xb21   :  { %2797 = vst [vmem:[#allocation22 + $0x30] sm:$0xff] %v2789_v41  ;;  %v2790_v47 = vadd.f32 %v2782_v45, %v2723_v8 }
 0xb23   :  { %2798 = vst [vmem:[#allocation22 + $0x38] sm:$0xff] %v2790_v47 }
 0xb24   :  { %4389 = shalt.err (!%p4386_p2)
}
 0xb25   :  { %s4390_s30 = scalar_lea.hbm %s5584_s22, 1024 }
 0xb26   :  { %p4391_p3 = scmp.ne.s32.totalorder %s5584_s22, %s4390_s30  ;;  %p4394_p4 = scmp.lt.u32.totalorder %s4390_s30, %s5584_s22 }
 0xb28   :  { %p4396_p5 = pnand %p4394_p4, %p4391_p3 }
 0xb2a   :  { %4399 = shalt.err (!%p4396_p5)
}
 0xb2b   :  { %2846 = dma.vmem_to_hbm [thread:$0]  %s2841_s19, 1024, %s5584_s22, [#allocation23], %s4455_s23, %s4455_s23, %s4456_s24  }
 0xb2c   :  { %s4400_s4 = scalar_lea.vmem %s2854_s21, 128  ;;  %p4405_p7 = scmp.lt.s32.totalorder %s2854_s21, %s2854_s21 }
 0xb2d   :  { %p4401_p6 = scmp.ne.s32.totalorder %s2854_s21, %s4400_s4  ;;  %p4406_p8 = scmp.lt.s32.totalorder %s4400_s4, %s4400_s4 }
 0xb2f   :  { %p4407_p9 = por %p4406_p8, %p4405_p7 }
 0xb31   :  { %p4408_p10 = pnand %p4407_p9, %p4401_p6 }
 0xb33   :  { %4411 = shalt.err (!%p4408_p10)
}
 0xb34   :  { %s5627_s13 = sld [smem:[#allocation42_spill]] }
 0xb3a   :  { %s4412_s14 = scalar_lea.hbm %s5627_s13, 128 }
 0xb3b   :  { %p4413_p11 = scmp.ne.s32.totalorder %s5627_s13, %s4412_s14  ;;  %p4416_p12 = scmp.lt.u32.totalorder %s4412_s14, %s5627_s13 }
 0xb3d   :  { %p4418_p13 = pnand %p4416_p12, %p4413_p11 }
 0xb3f   :  { %4421 = shalt.err (!%p4418_p13)
}
 0xb40   :  { %2856 = dma.vmem_to_hbm [thread:$0]  %s2854_s21, 128, %s5627_s13, [#allocation23]  }
 0xb41   :  { %4432 = dma.done.wait [#allocation5], 1024  }
 0xb42   :  { %4433 = vsyncadd [#allocation5], 4294966272 }
 0xb43   :  { %4434 = dma.done.wait [#allocation20], 2048  }
 0xb44   :  { %4435 = vsyncadd [#allocation20], 4294965248 }
 0xb45   :  { %4436 = dma.done.wait [#allocation23], 1152  }
 0xb46   :  { %4437 = vsyncadd [#allocation23], 4294966144 }
 0xb47   :  { %2872 = vsyncpa [#allocation4], 1 }
 0xb48   :  { %2873 = vsyncpa [#allocation7], 1 }
 0xb49   :  { %2874 = vsyncpa [#allocation10], 1 }
 0xb4a   :  { %2875 = vsyncpa [#allocation13], 1 }
 0xb4b   :  { %2876 = vsyncpa [#allocation16], 1 }
 0xb4c   :  { %2877 = vsyncpa [#allocation5], 1 }
 0xb4d   :  { %2878 = vsyncpa [#allocation20], 1 }
 0xb4e   :  { %2879 = vsyncpa [#allocation23], 1 }

</bundles_post_ra>
